<compile_context>
chip_gen: v6e
topology: v6e:2x2x1
jax: 0.10.0
libtpu: 0.0.40
codegen_flags: <defaults>
</compile_context>

<pallas_src>
import jax
import jax.numpy as jnp
from jax.experimental import pallas as pl
from jax.experimental.pallas import tpu as pltpu


# ----------------------------------------------------------------------------
# Pallas kernel
# ----------------------------------------------------------------------------
def _make_lstm_dqn_kernel(num_layers: int, seq_len: int, hidden_size: int):
    H = hidden_size
    T = seq_len

    def kernel(*refs):
        # refs: x, (w_ih, w_hh, b) * num_layers, fc_w, fc_b, out
        x_ref = refs[0]
        layer_refs = refs[1:1 + 3 * num_layers]
        fc_w_ref = refs[1 + 3 * num_layers]
        fc_b_ref = refs[2 + 3 * num_layers]
        out_ref = refs[3 + 3 * num_layers]

        seq = x_ref[...]                              # (T, obs) for layer 0

        for l in range(num_layers):                   # static layer loop
            w_ih = layer_refs[3 * l][...]             # (in_l, 4H) cols = i,f,o,g
            w_hh = layer_refs[3 * l + 1][...]         # (H,   4H) cols = i,f,o,g
            b = layer_refs[3 * l + 2][...]            # (1,   4H)  (= b_ih + b_hh)

            # Hoisted input projection: one (T, in) x (in, 4H) matmul for all
            # timesteps (computed BEFORE the recurrence -> no hazard).
            xproj = jnp.dot(seq, w_ih,
                            preferred_element_type=jnp.float32) + b  # (T, 4H)

            h = jnp.zeros((1, H), jnp.float32)
            c = jnp.zeros((1, H), jnp.float32)
            hs = []
            for t in range(T):                        # fully unrolled time loop
                gates = xproj[t:t + 1, :] + jnp.dot(
                    h, w_hh, preferred_element_type=jnp.float32)      # (1, 4H)
                # Gate order permuted offline to (i, f, o | g):
                #   one contiguous sigmoid over 3H lanes + one tanh over H.
                sig = jax.nn.sigmoid(gates[:, 0:3 * H])
                i_g = sig[:, 0 * H:1 * H]
                f_g = sig[:, 1 * H:2 * H]
                o_g = sig[:, 2 * H:3 * H]
                g_g = jnp.tanh(gates[:, 3 * H:4 * H])
                c = f_g * c + i_g * g_g
                h = o_g * jnp.tanh(c)
                hs.append(h)

            seq = jnp.concatenate(hs, axis=0)         # (T, H) kept in vregs

        # Head: ReLU -> Linear over the whole (T, H) sequence at once.
        h_all = jnp.maximum(seq, 0.0)
        out_ref[...] = (jnp.dot(h_all, fc_w_ref[...],
                                preferred_element_type=jnp.float32)
                        + fc_b_ref[...])

    return kernel


# ----------------------------------------------------------------------------
# Offline parameter preprocessing (transpose + gate-permute + bias fold, ONCE)
# ----------------------------------------------------------------------------
def preprocess_params(params):
    """Converts PyTorch-layout params into kernel-ready tensors.

    PyTorch nn.LSTM gate row order is (i, f, g, o); we permute to (i, f, o, g)
    so in-kernel activations need one contiguous sigmoid + one tanh slice.
    """
    lstm_params = params["lstm"]
    fc_w, fc_b = params["fc"]
    H = lstm_params[0][1].shape[1]                    # w_hh: (4H, H)

    def permute_gates_rows(w):                        # (4H, ...) row blocks
        return jnp.concatenate(
            [w[0 * H:1 * H], w[1 * H:2 * H], w[3 * H:4 * H], w[2 * H:3 * H]],
            axis=0)

    tensors = []
    for (w_ih, w_hh, b_ih, b_hh) in lstm_params:
        tensors.append(jnp.transpose(permute_gates_rows(w_ih))
                       .astype(jnp.float32))          # (in, 4H)
        tensors.append(jnp.transpose(permute_gates_rows(w_hh))
                       .astype(jnp.float32))          # (H, 4H)
        tensors.append(permute_gates_rows(b_ih + b_hh)
                       .reshape(1, -1).astype(jnp.float32))            # (1, 4H)
    tensors.append(jnp.transpose(fc_w).astype(jnp.float32))            # (H, A)
    tensors.append(fc_b.reshape(1, -1).astype(jnp.float32))            # (1, A)

    return {
        "tensors": [jax.device_put(t) for t in tensors],
        "num_layers": len(lstm_params),
        "hidden_size": H,
        "n_actions": fc_w.shape[0],
    }


# ----------------------------------------------------------------------------
# Forward wrapper: just the pallas_call (no per-call weight massaging)
# ----------------------------------------------------------------------------
def lstm_dqn_forward(x, prepped):
    """x: (T, obs_size) float32.  Returns (T, n_actions) float32."""
    x = x.astype(jnp.float32)
    T = x.shape[0]
    num_layers = prepped["num_layers"]
    H = prepped["hidden_size"]
    A = prepped["n_actions"]

    kernel_inputs = [x] + list(prepped["tensors"])
    vmem_spec = pl.BlockSpec(memory_space=pltpu.MemorySpace.VMEM)

    return pl.pallas_call(
        _make_lstm_dqn_kernel(num_layers, T, H),
        out_shape=jax.ShapeDtypeStruct((T, A), jnp.float32),
        in_specs=[vmem_spec] * len(kernel_inputs),
        out_specs=vmem_spec,
    )(*kernel_inputs)


# ----------------------------------------------------------------------------
# Deterministic parameter init (mirrors nn.LSTM / nn.Linear default U(-k, k))
# ----------------------------------------------------------------------------
def init_params(key, obs_size, n_actions, hidden_size, hidden_layers):
    params = {"lstm": [], "fc": None}
    k_lstm = 1.0 / jnp.sqrt(hidden_size)
    for l in range(hidden_layers):
        in_l = obs_size if l == 0 else hidden_size
        key, k1, k2, k3, k4 = jax.random.split(key, 5)
        w_ih = jax.random.uniform(k1, (4 * hidden_size, in_l),
                                  minval=-k_lstm, maxval=k_lstm, dtype=jnp.float32)
        w_hh = jax.random.uniform(k2, (4 * hidden_size, hidden_size),
                                  minval=-k_lstm, maxval=k_lstm, dtype=jnp.float32)
        b_ih = jax.random.uniform(k3, (4 * hidden_size,),
                                  minval=-k_lstm, maxval=k_lstm, dtype=jnp.float32)
        b_hh = jax.random.uniform(k4, (4 * hidden_size,),
                                  minval=-k_lstm, maxval=k_lstm, dtype=jnp.float32)
        params["lstm"].append((w_ih, w_hh, b_ih, b_hh))
    k_fc = 1.0 / jnp.sqrt(hidden_size)
    key, k1, k2 = jax.random.split(key, 3)
    fc_w = jax.random.uniform(k1, (n_actions, hidden_size),
                              minval=-k_fc, maxval=k_fc, dtype=jnp.float32)
    fc_b = jax.random.uniform(k2, (n_actions,),
                              minval=-k_fc, maxval=k_fc, dtype=jnp.float32)
    params["fc"] = (fc_w, fc_b)
    return params


# ----------------------------------------------------------------------------
# Pure-JAX reference (same math as torch.nn.LSTM + ReLU + Linear, batch=1)
# ----------------------------------------------------------------------------
def lstm_dqn_ref(x, params):
    x = x.astype(jnp.float32)
    h_in = x
    for (w_ih, w_hh, b_ih, b_hh) in params["lstm"]:
        H = w_hh.shape[1]
        h = jnp.zeros((H,), jnp.float32)
        c = jnp.zeros((H,), jnp.float32)
        outs = []
        for t in range(x.shape[0]):
            gates = h_in[t] @ w_ih.T + b_ih + h @ w_hh.T + b_hh
            i = jax.nn.sigmoid(gates[0 * H:1 * H])
            f = jax.nn.sigmoid(gates[1 * H:2 * H])
            g = jnp.tanh(gates[2 * H:3 * H])
            o = jax.nn.sigmoid(gates[3 * H:4 * H])
            c = f * c + i * g
            h = o * jnp.tanh(c)
            outs.append(h)
        h_in = jnp.stack(outs, axis=0)
    fc_w, fc_b = params["fc"]
    return jnp.maximum(h_in, 0.0) @ fc_w.T + fc_b


if __name__ == "__main__":
    # Shapes consistent with LSTMDQN(obs_size=16, n_actions=4, hidden_size=32,
    # hidden_layers=3) applied to a (N=8, obs_size=16) observation tensor
    # (stateless=False => time axis T = N = 8, LSTM batch = 1).
    OBS, ACT, HID, LAYERS, T = 16, 4, 32, 3, 8

    key = jax.random.PRNGKey(0)
    key, kx, kp = jax.random.split(key, 3)
    x = jax.random.normal(kx, (T, OBS), dtype=jnp.float32)
    params = init_params(kp, OBS, ACT, HID, LAYERS)

    prepped = preprocess_params(params)               # done once, offline
    out = lstm_dqn_forward(x, prepped)
    out = jax.block_until_ready(out)

    ref = lstm_dqn_ref(x, params)
    assert out.shape == (T, ACT), out.shape
    assert jnp.allclose(out, ref, atol=1e-4, rtol=1e-4), (
        f"max abs err {jnp.max(jnp.abs(out - ref))}")

    print("KERNEL_OK")
</pallas_src>

<mosaic_0001>
module attributes {stable_mosaic.version = 11 : i64} {
  func.func @kernel(%arg0: memref<8x16xf32, #tpu.memory_space<vmem>>, %arg1: memref<16x128xf32, #tpu.memory_space<vmem>>, %arg2: memref<32x128xf32, #tpu.memory_space<vmem>>, %arg3: memref<1x128xf32, #tpu.memory_space<vmem>>, %arg4: memref<32x128xf32, #tpu.memory_space<vmem>>, %arg5: memref<32x128xf32, #tpu.memory_space<vmem>>, %arg6: memref<1x128xf32, #tpu.memory_space<vmem>>, %arg7: memref<32x128xf32, #tpu.memory_space<vmem>>, %arg8: memref<32x128xf32, #tpu.memory_space<vmem>>, %arg9: memref<1x128xf32, #tpu.memory_space<vmem>>, %arg10: memref<32x4xf32, #tpu.memory_space<vmem>>, %arg11: memref<1x4xf32, #tpu.memory_space<vmem>>, %arg12: memref<8x4xf32, #tpu.memory_space<vmem>>) attributes {dimension_semantics = [], scalar_prefetch = 0 : i64, scratch_operands = 0 : i64, tpu.core_type = #tpu.core_type<tc>} {
    %c0 = arith.constant 0 : index
    %c0_0 = arith.constant 0 : index
    %0 = vector.load %arg0[%c0, %c0_0] : memref<8x16xf32, #tpu.memory_space<vmem>>, vector<8x16xf32>
    %c0_1 = arith.constant 0 : index
    %c0_2 = arith.constant 0 : index
    %1 = vector.load %arg1[%c0_1, %c0_2] : memref<16x128xf32, #tpu.memory_space<vmem>>, vector<16x128xf32>
    %c0_3 = arith.constant 0 : index
    %c0_4 = arith.constant 0 : index
    %2 = vector.load %arg2[%c0_3, %c0_4] : memref<32x128xf32, #tpu.memory_space<vmem>>, vector<32x128xf32>
    %c0_5 = arith.constant 0 : index
    %c0_6 = arith.constant 0 : index
    %3 = vector.load %arg3[%c0_5, %c0_6] : memref<1x128xf32, #tpu.memory_space<vmem>>, vector<1x128xf32>
    %cst = arith.constant dense<0.000000e+00> : vector<8x128xf32>
    %4 = tpu.matmul %0, %1, %cst {dimension_numbers = #tpu.dot_dimension_numbers<[1], [0], [0], [1], [0, 0, 1, 1], [], []>} : vector<8x16xf32>, vector<16x128xf32>, vector<8x128xf32> -> vector<8x128xf32>
    %5 = vector.broadcast %3 : vector<1x128xf32> to vector<8x128xf32>
    %6 = arith.addf %4, %5 : vector<8x128xf32>
    %cst_7 = arith.constant 0.000000e+00 : f32
    %7 = vector.broadcast %cst_7 : f32 to vector<1x32xf32>
    %cst_8 = arith.constant 0.000000e+00 : f32
    %8 = vector.broadcast %cst_8 : f32 to vector<1x32xf32>
    %9 = vector.extract_strided_slice %6 {offsets = [0, 0], sizes = [1, 128], strides = [1, 1]} : vector<8x128xf32> to vector<1x128xf32>
    %cst_9 = arith.constant dense<0.000000e+00> : vector<1x128xf32>
    %10 = tpu.matmul %7, %2, %cst_9 {dimension_numbers = #tpu.dot_dimension_numbers<[1], [0], [0], [1], [0, 0, 1, 1], [], []>} : vector<1x32xf32>, vector<32x128xf32>, vector<1x128xf32> -> vector<1x128xf32>
    %11 = arith.addf %9, %10 : vector<1x128xf32>
    %12 = vector.extract_strided_slice %11 {offsets = [0, 0], sizes = [1, 96], strides = [1, 1]} : vector<1x128xf32> to vector<1x96xf32>
    %13 = arith.negf %12 : vector<1x96xf32>
    %14 = math.exp %13 : vector<1x96xf32>
    %cst_10 = arith.constant 1.000000e+00 : f32
    %15 = vector.broadcast %cst_10 : f32 to vector<1x96xf32>
    %16 = arith.addf %15, %14 : vector<1x96xf32>
    %17 = arith.divf %15, %16 : vector<1x96xf32>
    %18 = vector.extract_strided_slice %17 {offsets = [0, 0], sizes = [1, 32], strides = [1, 1]} : vector<1x96xf32> to vector<1x32xf32>
    %19 = vector.extract_strided_slice %17 {offsets = [0, 32], sizes = [1, 32], strides = [1, 1]} : vector<1x96xf32> to vector<1x32xf32>
    %20 = vector.extract_strided_slice %17 {offsets = [0, 64], sizes = [1, 32], strides = [1, 1]} : vector<1x96xf32> to vector<1x32xf32>
    %21 = vector.extract_strided_slice %11 {offsets = [0, 96], sizes = [1, 32], strides = [1, 1]} : vector<1x128xf32> to vector<1x32xf32>
    %22 = math.tanh %21 : vector<1x32xf32>
    %23 = arith.mulf %19, %8 : vector<1x32xf32>
    %24 = arith.mulf %18, %22 : vector<1x32xf32>
    %25 = arith.addf %23, %24 : vector<1x32xf32>
    %26 = math.tanh %25 : vector<1x32xf32>
    %27 = arith.mulf %20, %26 : vector<1x32xf32>
    %28 = vector.extract_strided_slice %6 {offsets = [1, 0], sizes = [1, 128], strides = [1, 1]} : vector<8x128xf32> to vector<1x128xf32>
    %cst_11 = arith.constant dense<0.000000e+00> : vector<1x128xf32>
    %29 = tpu.matmul %27, %2, %cst_11 {dimension_numbers = #tpu.dot_dimension_numbers<[1], [0], [0], [1], [0, 0, 1, 1], [], []>} : vector<1x32xf32>, vector<32x128xf32>, vector<1x128xf32> -> vector<1x128xf32>
    %30 = arith.addf %28, %29 : vector<1x128xf32>
    %31 = vector.extract_strided_slice %30 {offsets = [0, 0], sizes = [1, 96], strides = [1, 1]} : vector<1x128xf32> to vector<1x96xf32>
    %32 = arith.negf %31 : vector<1x96xf32>
    %33 = math.exp %32 : vector<1x96xf32>
    %cst_12 = arith.constant 1.000000e+00 : f32
    %34 = vector.broadcast %cst_12 : f32 to vector<1x96xf32>
    %35 = arith.addf %34, %33 : vector<1x96xf32>
    %36 = arith.divf %34, %35 : vector<1x96xf32>
    %37 = vector.extract_strided_slice %36 {offsets = [0, 0], sizes = [1, 32], strides = [1, 1]} : vector<1x96xf32> to vector<1x32xf32>
    %38 = vector.extract_strided_slice %36 {offsets = [0, 32], sizes = [1, 32], strides = [1, 1]} : vector<1x96xf32> to vector<1x32xf32>
    %39 = vector.extract_strided_slice %36 {offsets = [0, 64], sizes = [1, 32], strides = [1, 1]} : vector<1x96xf32> to vector<1x32xf32>
    %40 = vector.extract_strided_slice %30 {offsets = [0, 96], sizes = [1, 32], strides = [1, 1]} : vector<1x128xf32> to vector<1x32xf32>
    %41 = math.tanh %40 : vector<1x32xf32>
    %42 = arith.mulf %38, %25 : vector<1x32xf32>
    %43 = arith.mulf %37, %41 : vector<1x32xf32>
    %44 = arith.addf %42, %43 : vector<1x32xf32>
    %45 = math.tanh %44 : vector<1x32xf32>
    %46 = arith.mulf %39, %45 : vector<1x32xf32>
    %47 = vector.extract_strided_slice %6 {offsets = [2, 0], sizes = [1, 128], strides = [1, 1]} : vector<8x128xf32> to vector<1x128xf32>
    %cst_13 = arith.constant dense<0.000000e+00> : vector<1x128xf32>
    %48 = tpu.matmul %46, %2, %cst_13 {dimension_numbers = #tpu.dot_dimension_numbers<[1], [0], [0], [1], [0, 0, 1, 1], [], []>} : vector<1x32xf32>, vector<32x128xf32>, vector<1x128xf32> -> vector<1x128xf32>
    %49 = arith.addf %47, %48 : vector<1x128xf32>
    %50 = vector.extract_strided_slice %49 {offsets = [0, 0], sizes = [1, 96], strides = [1, 1]} : vector<1x128xf32> to vector<1x96xf32>
    %51 = arith.negf %50 : vector<1x96xf32>
    %52 = math.exp %51 : vector<1x96xf32>
    %cst_14 = arith.constant 1.000000e+00 : f32
    %53 = vector.broadcast %cst_14 : f32 to vector<1x96xf32>
    %54 = arith.addf %53, %52 : vector<1x96xf32>
    %55 = arith.divf %53, %54 : vector<1x96xf32>
    %56 = vector.extract_strided_slice %55 {offsets = [0, 0], sizes = [1, 32], strides = [1, 1]} : vector<1x96xf32> to vector<1x32xf32>
    %57 = vector.extract_strided_slice %55 {offsets = [0, 32], sizes = [1, 32], strides = [1, 1]} : vector<1x96xf32> to vector<1x32xf32>
    %58 = vector.extract_strided_slice %55 {offsets = [0, 64], sizes = [1, 32], strides = [1, 1]} : vector<1x96xf32> to vector<1x32xf32>
    %59 = vector.extract_strided_slice %49 {offsets = [0, 96], sizes = [1, 32], strides = [1, 1]} : vector<1x128xf32> to vector<1x32xf32>
    %60 = math.tanh %59 : vector<1x32xf32>
    %61 = arith.mulf %57, %44 : vector<1x32xf32>
    %62 = arith.mulf %56, %60 : vector<1x32xf32>
    %63 = arith.addf %61, %62 : vector<1x32xf32>
    %64 = math.tanh %63 : vector<1x32xf32>
    %65 = arith.mulf %58, %64 : vector<1x32xf32>
    %66 = vector.extract_strided_slice %6 {offsets = [3, 0], sizes = [1, 128], strides = [1, 1]} : vector<8x128xf32> to vector<1x128xf32>
    %cst_15 = arith.constant dense<0.000000e+00> : vector<1x128xf32>
    %67 = tpu.matmul %65, %2, %cst_15 {dimension_numbers = #tpu.dot_dimension_numbers<[1], [0], [0], [1], [0, 0, 1, 1], [], []>} : vector<1x32xf32>, vector<32x128xf32>, vector<1x128xf32> -> vector<1x128xf32>
    %68 = arith.addf %66, %67 : vector<1x128xf32>
    %69 = vector.extract_strided_slice %68 {offsets = [0, 0], sizes = [1, 96], strides = [1, 1]} : vector<1x128xf32> to vector<1x96xf32>
    %70 = arith.negf %69 : vector<1x96xf32>
    %71 = math.exp %70 : vector<1x96xf32>
    %cst_16 = arith.constant 1.000000e+00 : f32
    %72 = vector.broadcast %cst_16 : f32 to vector<1x96xf32>
    %73 = arith.addf %72, %71 : vector<1x96xf32>
    %74 = arith.divf %72, %73 : vector<1x96xf32>
    %75 = vector.extract_strided_slice %74 {offsets = [0, 0], sizes = [1, 32], strides = [1, 1]} : vector<1x96xf32> to vector<1x32xf32>
    %76 = vector.extract_strided_slice %74 {offsets = [0, 32], sizes = [1, 32], strides = [1, 1]} : vector<1x96xf32> to vector<1x32xf32>
    %77 = vector.extract_strided_slice %74 {offsets = [0, 64], sizes = [1, 32], strides = [1, 1]} : vector<1x96xf32> to vector<1x32xf32>
    %78 = vector.extract_strided_slice %68 {offsets = [0, 96], sizes = [1, 32], strides = [1, 1]} : vector<1x128xf32> to vector<1x32xf32>
    %79 = math.tanh %78 : vector<1x32xf32>
    %80 = arith.mulf %76, %63 : vector<1x32xf32>
    %81 = arith.mulf %75, %79 : vector<1x32xf32>
    %82 = arith.addf %80, %81 : vector<1x32xf32>
    %83 = math.tanh %82 : vector<1x32xf32>
    %84 = arith.mulf %77, %83 : vector<1x32xf32>
    %85 = vector.extract_strided_slice %6 {offsets = [4, 0], sizes = [1, 128], strides = [1, 1]} : vector<8x128xf32> to vector<1x128xf32>
    %cst_17 = arith.constant dense<0.000000e+00> : vector<1x128xf32>
    %86 = tpu.matmul %84, %2, %cst_17 {dimension_numbers = #tpu.dot_dimension_numbers<[1], [0], [0], [1], [0, 0, 1, 1], [], []>} : vector<1x32xf32>, vector<32x128xf32>, vector<1x128xf32> -> vector<1x128xf32>
    %87 = arith.addf %85, %86 : vector<1x128xf32>
    %88 = vector.extract_strided_slice %87 {offsets = [0, 0], sizes = [1, 96], strides = [1, 1]} : vector<1x128xf32> to vector<1x96xf32>
    %89 = arith.negf %88 : vector<1x96xf32>
    %90 = math.exp %89 : vector<1x96xf32>
    %cst_18 = arith.constant 1.000000e+00 : f32
    %91 = vector.broadcast %cst_18 : f32 to vector<1x96xf32>
    %92 = arith.addf %91, %90 : vector<1x96xf32>
    %93 = arith.divf %91, %92 : vector<1x96xf32>
    %94 = vector.extract_strided_slice %93 {offsets = [0, 0], sizes = [1, 32], strides = [1, 1]} : vector<1x96xf32> to vector<1x32xf32>
    %95 = vector.extract_strided_slice %93 {offsets = [0, 32], sizes = [1, 32], strides = [1, 1]} : vector<1x96xf32> to vector<1x32xf32>
    %96 = vector.extract_strided_slice %93 {offsets = [0, 64], sizes = [1, 32], strides = [1, 1]} : vector<1x96xf32> to vector<1x32xf32>
    %97 = vector.extract_strided_slice %87 {offsets = [0, 96], sizes = [1, 32], strides = [1, 1]} : vector<1x128xf32> to vector<1x32xf32>
    %98 = math.tanh %97 : vector<1x32xf32>
    %99 = arith.mulf %95, %82 : vector<1x32xf32>
    %100 = arith.mulf %94, %98 : vector<1x32xf32>
    %101 = arith.addf %99, %100 : vector<1x32xf32>
    %102 = math.tanh %101 : vector<1x32xf32>
    %103 = arith.mulf %96, %102 : vector<1x32xf32>
    %104 = vector.extract_strided_slice %6 {offsets = [5, 0], sizes = [1, 128], strides = [1, 1]} : vector<8x128xf32> to vector<1x128xf32>
    %cst_19 = arith.constant dense<0.000000e+00> : vector<1x128xf32>
    %105 = tpu.matmul %103, %2, %cst_19 {dimension_numbers = #tpu.dot_dimension_numbers<[1], [0], [0], [1], [0, 0, 1, 1], [], []>} : vector<1x32xf32>, vector<32x128xf32>, vector<1x128xf32> -> vector<1x128xf32>
    %106 = arith.addf %104, %105 : vector<1x128xf32>
    %107 = vector.extract_strided_slice %106 {offsets = [0, 0], sizes = [1, 96], strides = [1, 1]} : vector<1x128xf32> to vector<1x96xf32>
    %108 = arith.negf %107 : vector<1x96xf32>
    %109 = math.exp %108 : vector<1x96xf32>
    %cst_20 = arith.constant 1.000000e+00 : f32
    %110 = vector.broadcast %cst_20 : f32 to vector<1x96xf32>
    %111 = arith.addf %110, %109 : vector<1x96xf32>
    %112 = arith.divf %110, %111 : vector<1x96xf32>
    %113 = vector.extract_strided_slice %112 {offsets = [0, 0], sizes = [1, 32], strides = [1, 1]} : vector<1x96xf32> to vector<1x32xf32>
    %114 = vector.extract_strided_slice %112 {offsets = [0, 32], sizes = [1, 32], strides = [1, 1]} : vector<1x96xf32> to vector<1x32xf32>
    %115 = vector.extract_strided_slice %112 {offsets = [0, 64], sizes = [1, 32], strides = [1, 1]} : vector<1x96xf32> to vector<1x32xf32>
    %116 = vector.extract_strided_slice %106 {offsets = [0, 96], sizes = [1, 32], strides = [1, 1]} : vector<1x128xf32> to vector<1x32xf32>
    %117 = math.tanh %116 : vector<1x32xf32>
    %118 = arith.mulf %114, %101 : vector<1x32xf32>
    %119 = arith.mulf %113, %117 : vector<1x32xf32>
    %120 = arith.addf %118, %119 : vector<1x32xf32>
    %121 = math.tanh %120 : vector<1x32xf32>
    %122 = arith.mulf %115, %121 : vector<1x32xf32>
    %123 = vector.extract_strided_slice %6 {offsets = [6, 0], sizes = [1, 128], strides = [1, 1]} : vector<8x128xf32> to vector<1x128xf32>
    %cst_21 = arith.constant dense<0.000000e+00> : vector<1x128xf32>
    %124 = tpu.matmul %122, %2, %cst_21 {dimension_numbers = #tpu.dot_dimension_numbers<[1], [0], [0], [1], [0, 0, 1, 1], [], []>} : vector<1x32xf32>, vector<32x128xf32>, vector<1x128xf32> -> vector<1x128xf32>
    %125 = arith.addf %123, %124 : vector<1x128xf32>
    %126 = vector.extract_strided_slice %125 {offsets = [0, 0], sizes = [1, 96], strides = [1, 1]} : vector<1x128xf32> to vector<1x96xf32>
    %127 = arith.negf %126 : vector<1x96xf32>
    %128 = math.exp %127 : vector<1x96xf32>
    %cst_22 = arith.constant 1.000000e+00 : f32
    %129 = vector.broadcast %cst_22 : f32 to vector<1x96xf32>
    %130 = arith.addf %129, %128 : vector<1x96xf32>
    %131 = arith.divf %129, %130 : vector<1x96xf32>
    %132 = vector.extract_strided_slice %131 {offsets = [0, 0], sizes = [1, 32], strides = [1, 1]} : vector<1x96xf32> to vector<1x32xf32>
    %133 = vector.extract_strided_slice %131 {offsets = [0, 32], sizes = [1, 32], strides = [1, 1]} : vector<1x96xf32> to vector<1x32xf32>
    %134 = vector.extract_strided_slice %131 {offsets = [0, 64], sizes = [1, 32], strides = [1, 1]} : vector<1x96xf32> to vector<1x32xf32>
    %135 = vector.extract_strided_slice %125 {offsets = [0, 96], sizes = [1, 32], strides = [1, 1]} : vector<1x128xf32> to vector<1x32xf32>
    %136 = math.tanh %135 : vector<1x32xf32>
    %137 = arith.mulf %133, %120 : vector<1x32xf32>
    %138 = arith.mulf %132, %136 : vector<1x32xf32>
    %139 = arith.addf %137, %138 : vector<1x32xf32>
    %140 = math.tanh %139 : vector<1x32xf32>
    %141 = arith.mulf %134, %140 : vector<1x32xf32>
    %142 = vector.extract_strided_slice %6 {offsets = [7, 0], sizes = [1, 128], strides = [1, 1]} : vector<8x128xf32> to vector<1x128xf32>
    %cst_23 = arith.constant dense<0.000000e+00> : vector<1x128xf32>
    %143 = tpu.matmul %141, %2, %cst_23 {dimension_numbers = #tpu.dot_dimension_numbers<[1], [0], [0], [1], [0, 0, 1, 1], [], []>} : vector<1x32xf32>, vector<32x128xf32>, vector<1x128xf32> -> vector<1x128xf32>
    %144 = arith.addf %142, %143 : vector<1x128xf32>
    %145 = vector.extract_strided_slice %144 {offsets = [0, 0], sizes = [1, 96], strides = [1, 1]} : vector<1x128xf32> to vector<1x96xf32>
    %146 = arith.negf %145 : vector<1x96xf32>
    %147 = math.exp %146 : vector<1x96xf32>
    %cst_24 = arith.constant 1.000000e+00 : f32
    %148 = vector.broadcast %cst_24 : f32 to vector<1x96xf32>
    %149 = arith.addf %148, %147 : vector<1x96xf32>
    %150 = arith.divf %148, %149 : vector<1x96xf32>
    %151 = vector.extract_strided_slice %150 {offsets = [0, 0], sizes = [1, 32], strides = [1, 1]} : vector<1x96xf32> to vector<1x32xf32>
    %152 = vector.extract_strided_slice %150 {offsets = [0, 32], sizes = [1, 32], strides = [1, 1]} : vector<1x96xf32> to vector<1x32xf32>
    %153 = vector.extract_strided_slice %150 {offsets = [0, 64], sizes = [1, 32], strides = [1, 1]} : vector<1x96xf32> to vector<1x32xf32>
    %154 = vector.extract_strided_slice %144 {offsets = [0, 96], sizes = [1, 32], strides = [1, 1]} : vector<1x128xf32> to vector<1x32xf32>
    %155 = math.tanh %154 : vector<1x32xf32>
    %156 = arith.mulf %152, %139 : vector<1x32xf32>
    %157 = arith.mulf %151, %155 : vector<1x32xf32>
    %158 = arith.addf %156, %157 : vector<1x32xf32>
    %159 = math.tanh %158 : vector<1x32xf32>
    %160 = arith.mulf %153, %159 : vector<1x32xf32>
    %161 = tpu.concatenate %27, %46, %65, %84, %103, %122, %141, %160 in 0 : vector<1x32xf32>, vector<1x32xf32>, vector<1x32xf32>, vector<1x32xf32>, vector<1x32xf32>, vector<1x32xf32>, vector<1x32xf32>, vector<1x32xf32> -> vector<8x32xf32>
    %c0_25 = arith.constant 0 : index
    %c0_26 = arith.constant 0 : index
    %162 = vector.load %arg4[%c0_25, %c0_26] : memref<32x128xf32, #tpu.memory_space<vmem>>, vector<32x128xf32>
    %c0_27 = arith.constant 0 : index
    %c0_28 = arith.constant 0 : index
    %163 = vector.load %arg5[%c0_27, %c0_28] : memref<32x128xf32, #tpu.memory_space<vmem>>, vector<32x128xf32>
    %c0_29 = arith.constant 0 : index
    %c0_30 = arith.constant 0 : index
    %164 = vector.load %arg6[%c0_29, %c0_30] : memref<1x128xf32, #tpu.memory_space<vmem>>, vector<1x128xf32>
    %cst_31 = arith.constant dense<0.000000e+00> : vector<8x128xf32>
    %165 = tpu.matmul %161, %162, %cst_31 {dimension_numbers = #tpu.dot_dimension_numbers<[1], [0], [0], [1], [0, 0, 1, 1], [], []>} : vector<8x32xf32>, vector<32x128xf32>, vector<8x128xf32> -> vector<8x128xf32>
    %166 = vector.broadcast %164 : vector<1x128xf32> to vector<8x128xf32>
    %167 = arith.addf %165, %166 : vector<8x128xf32>
    %cst_32 = arith.constant 0.000000e+00 : f32
    %168 = vector.broadcast %cst_32 : f32 to vector<1x32xf32>
    %cst_33 = arith.constant 0.000000e+00 : f32
    %169 = vector.broadcast %cst_33 : f32 to vector<1x32xf32>
    %170 = vector.extract_strided_slice %167 {offsets = [0, 0], sizes = [1, 128], strides = [1, 1]} : vector<8x128xf32> to vector<1x128xf32>
    %cst_34 = arith.constant dense<0.000000e+00> : vector<1x128xf32>
    %171 = tpu.matmul %168, %163, %cst_34 {dimension_numbers = #tpu.dot_dimension_numbers<[1], [0], [0], [1], [0, 0, 1, 1], [], []>} : vector<1x32xf32>, vector<32x128xf32>, vector<1x128xf32> -> vector<1x128xf32>
    %172 = arith.addf %170, %171 : vector<1x128xf32>
    %173 = vector.extract_strided_slice %172 {offsets = [0, 0], sizes = [1, 96], strides = [1, 1]} : vector<1x128xf32> to vector<1x96xf32>
    %174 = arith.negf %173 : vector<1x96xf32>
    %175 = math.exp %174 : vector<1x96xf32>
    %cst_35 = arith.constant 1.000000e+00 : f32
    %176 = vector.broadcast %cst_35 : f32 to vector<1x96xf32>
    %177 = arith.addf %176, %175 : vector<1x96xf32>
    %178 = arith.divf %176, %177 : vector<1x96xf32>
    %179 = vector.extract_strided_slice %178 {offsets = [0, 0], sizes = [1, 32], strides = [1, 1]} : vector<1x96xf32> to vector<1x32xf32>
    %180 = vector.extract_strided_slice %178 {offsets = [0, 32], sizes = [1, 32], strides = [1, 1]} : vector<1x96xf32> to vector<1x32xf32>
    %181 = vector.extract_strided_slice %178 {offsets = [0, 64], sizes = [1, 32], strides = [1, 1]} : vector<1x96xf32> to vector<1x32xf32>
    %182 = vector.extract_strided_slice %172 {offsets = [0, 96], sizes = [1, 32], strides = [1, 1]} : vector<1x128xf32> to vector<1x32xf32>
    %183 = math.tanh %182 : vector<1x32xf32>
    %184 = arith.mulf %180, %169 : vector<1x32xf32>
    %185 = arith.mulf %179, %183 : vector<1x32xf32>
    %186 = arith.addf %184, %185 : vector<1x32xf32>
    %187 = math.tanh %186 : vector<1x32xf32>
    %188 = arith.mulf %181, %187 : vector<1x32xf32>
    %189 = vector.extract_strided_slice %167 {offsets = [1, 0], sizes = [1, 128], strides = [1, 1]} : vector<8x128xf32> to vector<1x128xf32>
    %cst_36 = arith.constant dense<0.000000e+00> : vector<1x128xf32>
    %190 = tpu.matmul %188, %163, %cst_36 {dimension_numbers = #tpu.dot_dimension_numbers<[1], [0], [0], [1], [0, 0, 1, 1], [], []>} : vector<1x32xf32>, vector<32x128xf32>, vector<1x128xf32> -> vector<1x128xf32>
    %191 = arith.addf %189, %190 : vector<1x128xf32>
    %192 = vector.extract_strided_slice %191 {offsets = [0, 0], sizes = [1, 96], strides = [1, 1]} : vector<1x128xf32> to vector<1x96xf32>
    %193 = arith.negf %192 : vector<1x96xf32>
    %194 = math.exp %193 : vector<1x96xf32>
    %cst_37 = arith.constant 1.000000e+00 : f32
    %195 = vector.broadcast %cst_37 : f32 to vector<1x96xf32>
    %196 = arith.addf %195, %194 : vector<1x96xf32>
    %197 = arith.divf %195, %196 : vector<1x96xf32>
    %198 = vector.extract_strided_slice %197 {offsets = [0, 0], sizes = [1, 32], strides = [1, 1]} : vector<1x96xf32> to vector<1x32xf32>
    %199 = vector.extract_strided_slice %197 {offsets = [0, 32], sizes = [1, 32], strides = [1, 1]} : vector<1x96xf32> to vector<1x32xf32>
    %200 = vector.extract_strided_slice %197 {offsets = [0, 64], sizes = [1, 32], strides = [1, 1]} : vector<1x96xf32> to vector<1x32xf32>
    %201 = vector.extract_strided_slice %191 {offsets = [0, 96], sizes = [1, 32], strides = [1, 1]} : vector<1x128xf32> to vector<1x32xf32>
    %202 = math.tanh %201 : vector<1x32xf32>
    %203 = arith.mulf %199, %186 : vector<1x32xf32>
    %204 = arith.mulf %198, %202 : vector<1x32xf32>
    %205 = arith.addf %203, %204 : vector<1x32xf32>
    %206 = math.tanh %205 : vector<1x32xf32>
    %207 = arith.mulf %200, %206 : vector<1x32xf32>
    %208 = vector.extract_strided_slice %167 {offsets = [2, 0], sizes = [1, 128], strides = [1, 1]} : vector<8x128xf32> to vector<1x128xf32>
    %cst_38 = arith.constant dense<0.000000e+00> : vector<1x128xf32>
    %209 = tpu.matmul %207, %163, %cst_38 {dimension_numbers = #tpu.dot_dimension_numbers<[1], [0], [0], [1], [0, 0, 1, 1], [], []>} : vector<1x32xf32>, vector<32x128xf32>, vector<1x128xf32> -> vector<1x128xf32>
    %210 = arith.addf %208, %209 : vector<1x128xf32>
    %211 = vector.extract_strided_slice %210 {offsets = [0, 0], sizes = [1, 96], strides = [1, 1]} : vector<1x128xf32> to vector<1x96xf32>
    %212 = arith.negf %211 : vector<1x96xf32>
    %213 = math.exp %212 : vector<1x96xf32>
    %cst_39 = arith.constant 1.000000e+00 : f32
    %214 = vector.broadcast %cst_39 : f32 to vector<1x96xf32>
    %215 = arith.addf %214, %213 : vector<1x96xf32>
    %216 = arith.divf %214, %215 : vector<1x96xf32>
    %217 = vector.extract_strided_slice %216 {offsets = [0, 0], sizes = [1, 32], strides = [1, 1]} : vector<1x96xf32> to vector<1x32xf32>
    %218 = vector.extract_strided_slice %216 {offsets = [0, 32], sizes = [1, 32], strides = [1, 1]} : vector<1x96xf32> to vector<1x32xf32>
    %219 = vector.extract_strided_slice %216 {offsets = [0, 64], sizes = [1, 32], strides = [1, 1]} : vector<1x96xf32> to vector<1x32xf32>
    %220 = vector.extract_strided_slice %210 {offsets = [0, 96], sizes = [1, 32], strides = [1, 1]} : vector<1x128xf32> to vector<1x32xf32>
    %221 = math.tanh %220 : vector<1x32xf32>
    %222 = arith.mulf %218, %205 : vector<1x32xf32>
    %223 = arith.mulf %217, %221 : vector<1x32xf32>
    %224 = arith.addf %222, %223 : vector<1x32xf32>
    %225 = math.tanh %224 : vector<1x32xf32>
    %226 = arith.mulf %219, %225 : vector<1x32xf32>
    %227 = vector.extract_strided_slice %167 {offsets = [3, 0], sizes = [1, 128], strides = [1, 1]} : vector<8x128xf32> to vector<1x128xf32>
    %cst_40 = arith.constant dense<0.000000e+00> : vector<1x128xf32>
    %228 = tpu.matmul %226, %163, %cst_40 {dimension_numbers = #tpu.dot_dimension_numbers<[1], [0], [0], [1], [0, 0, 1, 1], [], []>} : vector<1x32xf32>, vector<32x128xf32>, vector<1x128xf32> -> vector<1x128xf32>
    %229 = arith.addf %227, %228 : vector<1x128xf32>
    %230 = vector.extract_strided_slice %229 {offsets = [0, 0], sizes = [1, 96], strides = [1, 1]} : vector<1x128xf32> to vector<1x96xf32>
    %231 = arith.negf %230 : vector<1x96xf32>
    %232 = math.exp %231 : vector<1x96xf32>
    %cst_41 = arith.constant 1.000000e+00 : f32
    %233 = vector.broadcast %cst_41 : f32 to vector<1x96xf32>
    %234 = arith.addf %233, %232 : vector<1x96xf32>
    %235 = arith.divf %233, %234 : vector<1x96xf32>
    %236 = vector.extract_strided_slice %235 {offsets = [0, 0], sizes = [1, 32], strides = [1, 1]} : vector<1x96xf32> to vector<1x32xf32>
    %237 = vector.extract_strided_slice %235 {offsets = [0, 32], sizes = [1, 32], strides = [1, 1]} : vector<1x96xf32> to vector<1x32xf32>
    %238 = vector.extract_strided_slice %235 {offsets = [0, 64], sizes = [1, 32], strides = [1, 1]} : vector<1x96xf32> to vector<1x32xf32>
    %239 = vector.extract_strided_slice %229 {offsets = [0, 96], sizes = [1, 32], strides = [1, 1]} : vector<1x128xf32> to vector<1x32xf32>
    %240 = math.tanh %239 : vector<1x32xf32>
    %241 = arith.mulf %237, %224 : vector<1x32xf32>
    %242 = arith.mulf %236, %240 : vector<1x32xf32>
    %243 = arith.addf %241, %242 : vector<1x32xf32>
    %244 = math.tanh %243 : vector<1x32xf32>
    %245 = arith.mulf %238, %244 : vector<1x32xf32>
    %246 = vector.extract_strided_slice %167 {offsets = [4, 0], sizes = [1, 128], strides = [1, 1]} : vector<8x128xf32> to vector<1x128xf32>
    %cst_42 = arith.constant dense<0.000000e+00> : vector<1x128xf32>
    %247 = tpu.matmul %245, %163, %cst_42 {dimension_numbers = #tpu.dot_dimension_numbers<[1], [0], [0], [1], [0, 0, 1, 1], [], []>} : vector<1x32xf32>, vector<32x128xf32>, vector<1x128xf32> -> vector<1x128xf32>
    %248 = arith.addf %246, %247 : vector<1x128xf32>
    %249 = vector.extract_strided_slice %248 {offsets = [0, 0], sizes = [1, 96], strides = [1, 1]} : vector<1x128xf32> to vector<1x96xf32>
    %250 = arith.negf %249 : vector<1x96xf32>
    %251 = math.exp %250 : vector<1x96xf32>
    %cst_43 = arith.constant 1.000000e+00 : f32
    %252 = vector.broadcast %cst_43 : f32 to vector<1x96xf32>
    %253 = arith.addf %252, %251 : vector<1x96xf32>
    %254 = arith.divf %252, %253 : vector<1x96xf32>
    %255 = vector.extract_strided_slice %254 {offsets = [0, 0], sizes = [1, 32], strides = [1, 1]} : vector<1x96xf32> to vector<1x32xf32>
    %256 = vector.extract_strided_slice %254 {offsets = [0, 32], sizes = [1, 32], strides = [1, 1]} : vector<1x96xf32> to vector<1x32xf32>
    %257 = vector.extract_strided_slice %254 {offsets = [0, 64], sizes = [1, 32], strides = [1, 1]} : vector<1x96xf32> to vector<1x32xf32>
    %258 = vector.extract_strided_slice %248 {offsets = [0, 96], sizes = [1, 32], strides = [1, 1]} : vector<1x128xf32> to vector<1x32xf32>
    %259 = math.tanh %258 : vector<1x32xf32>
    %260 = arith.mulf %256, %243 : vector<1x32xf32>
    %261 = arith.mulf %255, %259 : vector<1x32xf32>
    %262 = arith.addf %260, %261 : vector<1x32xf32>
    %263 = math.tanh %262 : vector<1x32xf32>
    %264 = arith.mulf %257, %263 : vector<1x32xf32>
    %265 = vector.extract_strided_slice %167 {offsets = [5, 0], sizes = [1, 128], strides = [1, 1]} : vector<8x128xf32> to vector<1x128xf32>
    %cst_44 = arith.constant dense<0.000000e+00> : vector<1x128xf32>
    %266 = tpu.matmul %264, %163, %cst_44 {dimension_numbers = #tpu.dot_dimension_numbers<[1], [0], [0], [1], [0, 0, 1, 1], [], []>} : vector<1x32xf32>, vector<32x128xf32>, vector<1x128xf32> -> vector<1x128xf32>
    %267 = arith.addf %265, %266 : vector<1x128xf32>
    %268 = vector.extract_strided_slice %267 {offsets = [0, 0], sizes = [1, 96], strides = [1, 1]} : vector<1x128xf32> to vector<1x96xf32>
    %269 = arith.negf %268 : vector<1x96xf32>
    %270 = math.exp %269 : vector<1x96xf32>
    %cst_45 = arith.constant 1.000000e+00 : f32
    %271 = vector.broadcast %cst_45 : f32 to vector<1x96xf32>
    %272 = arith.addf %271, %270 : vector<1x96xf32>
    %273 = arith.divf %271, %272 : vector<1x96xf32>
    %274 = vector.extract_strided_slice %273 {offsets = [0, 0], sizes = [1, 32], strides = [1, 1]} : vector<1x96xf32> to vector<1x32xf32>
    %275 = vector.extract_strided_slice %273 {offsets = [0, 32], sizes = [1, 32], strides = [1, 1]} : vector<1x96xf32> to vector<1x32xf32>
    %276 = vector.extract_strided_slice %273 {offsets = [0, 64], sizes = [1, 32], strides = [1, 1]} : vector<1x96xf32> to vector<1x32xf32>
    %277 = vector.extract_strided_slice %267 {offsets = [0, 96], sizes = [1, 32], strides = [1, 1]} : vector<1x128xf32> to vector<1x32xf32>
    %278 = math.tanh %277 : vector<1x32xf32>
    %279 = arith.mulf %275, %262 : vector<1x32xf32>
    %280 = arith.mulf %274, %278 : vector<1x32xf32>
    %281 = arith.addf %279, %280 : vector<1x32xf32>
    %282 = math.tanh %281 : vector<1x32xf32>
    %283 = arith.mulf %276, %282 : vector<1x32xf32>
    %284 = vector.extract_strided_slice %167 {offsets = [6, 0], sizes = [1, 128], strides = [1, 1]} : vector<8x128xf32> to vector<1x128xf32>
    %cst_46 = arith.constant dense<0.000000e+00> : vector<1x128xf32>
    %285 = tpu.matmul %283, %163, %cst_46 {dimension_numbers = #tpu.dot_dimension_numbers<[1], [0], [0], [1], [0, 0, 1, 1], [], []>} : vector<1x32xf32>, vector<32x128xf32>, vector<1x128xf32> -> vector<1x128xf32>
    %286 = arith.addf %284, %285 : vector<1x128xf32>
    %287 = vector.extract_strided_slice %286 {offsets = [0, 0], sizes = [1, 96], strides = [1, 1]} : vector<1x128xf32> to vector<1x96xf32>
    %288 = arith.negf %287 : vector<1x96xf32>
    %289 = math.exp %288 : vector<1x96xf32>
    %cst_47 = arith.constant 1.000000e+00 : f32
    %290 = vector.broadcast %cst_47 : f32 to vector<1x96xf32>
    %291 = arith.addf %290, %289 : vector<1x96xf32>
    %292 = arith.divf %290, %291 : vector<1x96xf32>
    %293 = vector.extract_strided_slice %292 {offsets = [0, 0], sizes = [1, 32], strides = [1, 1]} : vector<1x96xf32> to vector<1x32xf32>
    %294 = vector.extract_strided_slice %292 {offsets = [0, 32], sizes = [1, 32], strides = [1, 1]} : vector<1x96xf32> to vector<1x32xf32>
    %295 = vector.extract_strided_slice %292 {offsets = [0, 64], sizes = [1, 32], strides = [1, 1]} : vector<1x96xf32> to vector<1x32xf32>
    %296 = vector.extract_strided_slice %286 {offsets = [0, 96], sizes = [1, 32], strides = [1, 1]} : vector<1x128xf32> to vector<1x32xf32>
    %297 = math.tanh %296 : vector<1x32xf32>
    %298 = arith.mulf %294, %281 : vector<1x32xf32>
    %299 = arith.mulf %293, %297 : vector<1x32xf32>
    %300 = arith.addf %298, %299 : vector<1x32xf32>
    %301 = math.tanh %300 : vector<1x32xf32>
    %302 = arith.mulf %295, %301 : vector<1x32xf32>
    %303 = vector.extract_strided_slice %167 {offsets = [7, 0], sizes = [1, 128], strides = [1, 1]} : vector<8x128xf32> to vector<1x128xf32>
    %cst_48 = arith.constant dense<0.000000e+00> : vector<1x128xf32>
    %304 = tpu.matmul %302, %163, %cst_48 {dimension_numbers = #tpu.dot_dimension_numbers<[1], [0], [0], [1], [0, 0, 1, 1], [], []>} : vector<1x32xf32>, vector<32x128xf32>, vector<1x128xf32> -> vector<1x128xf32>
    %305 = arith.addf %303, %304 : vector<1x128xf32>
    %306 = vector.extract_strided_slice %305 {offsets = [0, 0], sizes = [1, 96], strides = [1, 1]} : vector<1x128xf32> to vector<1x96xf32>
    %307 = arith.negf %306 : vector<1x96xf32>
    %308 = math.exp %307 : vector<1x96xf32>
    %cst_49 = arith.constant 1.000000e+00 : f32
    %309 = vector.broadcast %cst_49 : f32 to vector<1x96xf32>
    %310 = arith.addf %309, %308 : vector<1x96xf32>
    %311 = arith.divf %309, %310 : vector<1x96xf32>
    %312 = vector.extract_strided_slice %311 {offsets = [0, 0], sizes = [1, 32], strides = [1, 1]} : vector<1x96xf32> to vector<1x32xf32>
    %313 = vector.extract_strided_slice %311 {offsets = [0, 32], sizes = [1, 32], strides = [1, 1]} : vector<1x96xf32> to vector<1x32xf32>
    %314 = vector.extract_strided_slice %311 {offsets = [0, 64], sizes = [1, 32], strides = [1, 1]} : vector<1x96xf32> to vector<1x32xf32>
    %315 = vector.extract_strided_slice %305 {offsets = [0, 96], sizes = [1, 32], strides = [1, 1]} : vector<1x128xf32> to vector<1x32xf32>
    %316 = math.tanh %315 : vector<1x32xf32>
    %317 = arith.mulf %313, %300 : vector<1x32xf32>
    %318 = arith.mulf %312, %316 : vector<1x32xf32>
    %319 = arith.addf %317, %318 : vector<1x32xf32>
    %320 = math.tanh %319 : vector<1x32xf32>
    %321 = arith.mulf %314, %320 : vector<1x32xf32>
    %322 = tpu.concatenate %188, %207, %226, %245, %264, %283, %302, %321 in 0 : vector<1x32xf32>, vector<1x32xf32>, vector<1x32xf32>, vector<1x32xf32>, vector<1x32xf32>, vector<1x32xf32>, vector<1x32xf32>, vector<1x32xf32> -> vector<8x32xf32>
    %c0_50 = arith.constant 0 : index
    %c0_51 = arith.constant 0 : index
    %323 = vector.load %arg7[%c0_50, %c0_51] : memref<32x128xf32, #tpu.memory_space<vmem>>, vector<32x128xf32>
    %c0_52 = arith.constant 0 : index
    %c0_53 = arith.constant 0 : index
    %324 = vector.load %arg8[%c0_52, %c0_53] : memref<32x128xf32, #tpu.memory_space<vmem>>, vector<32x128xf32>
    %c0_54 = arith.constant 0 : index
    %c0_55 = arith.constant 0 : index
    %325 = vector.load %arg9[%c0_54, %c0_55] : memref<1x128xf32, #tpu.memory_space<vmem>>, vector<1x128xf32>
    %cst_56 = arith.constant dense<0.000000e+00> : vector<8x128xf32>
    %326 = tpu.matmul %322, %323, %cst_56 {dimension_numbers = #tpu.dot_dimension_numbers<[1], [0], [0], [1], [0, 0, 1, 1], [], []>} : vector<8x32xf32>, vector<32x128xf32>, vector<8x128xf32> -> vector<8x128xf32>
    %327 = vector.broadcast %325 : vector<1x128xf32> to vector<8x128xf32>
    %328 = arith.addf %326, %327 : vector<8x128xf32>
    %cst_57 = arith.constant 0.000000e+00 : f32
    %329 = vector.broadcast %cst_57 : f32 to vector<1x32xf32>
    %cst_58 = arith.constant 0.000000e+00 : f32
    %330 = vector.broadcast %cst_58 : f32 to vector<1x32xf32>
    %331 = vector.extract_strided_slice %328 {offsets = [0, 0], sizes = [1, 128], strides = [1, 1]} : vector<8x128xf32> to vector<1x128xf32>
    %cst_59 = arith.constant dense<0.000000e+00> : vector<1x128xf32>
    %332 = tpu.matmul %329, %324, %cst_59 {dimension_numbers = #tpu.dot_dimension_numbers<[1], [0], [0], [1], [0, 0, 1, 1], [], []>} : vector<1x32xf32>, vector<32x128xf32>, vector<1x128xf32> -> vector<1x128xf32>
    %333 = arith.addf %331, %332 : vector<1x128xf32>
    %334 = vector.extract_strided_slice %333 {offsets = [0, 0], sizes = [1, 96], strides = [1, 1]} : vector<1x128xf32> to vector<1x96xf32>
    %335 = arith.negf %334 : vector<1x96xf32>
    %336 = math.exp %335 : vector<1x96xf32>
    %cst_60 = arith.constant 1.000000e+00 : f32
    %337 = vector.broadcast %cst_60 : f32 to vector<1x96xf32>
    %338 = arith.addf %337, %336 : vector<1x96xf32>
    %339 = arith.divf %337, %338 : vector<1x96xf32>
    %340 = vector.extract_strided_slice %339 {offsets = [0, 0], sizes = [1, 32], strides = [1, 1]} : vector<1x96xf32> to vector<1x32xf32>
    %341 = vector.extract_strided_slice %339 {offsets = [0, 32], sizes = [1, 32], strides = [1, 1]} : vector<1x96xf32> to vector<1x32xf32>
    %342 = vector.extract_strided_slice %339 {offsets = [0, 64], sizes = [1, 32], strides = [1, 1]} : vector<1x96xf32> to vector<1x32xf32>
    %343 = vector.extract_strided_slice %333 {offsets = [0, 96], sizes = [1, 32], strides = [1, 1]} : vector<1x128xf32> to vector<1x32xf32>
    %344 = math.tanh %343 : vector<1x32xf32>
    %345 = arith.mulf %341, %330 : vector<1x32xf32>
    %346 = arith.mulf %340, %344 : vector<1x32xf32>
    %347 = arith.addf %345, %346 : vector<1x32xf32>
    %348 = math.tanh %347 : vector<1x32xf32>
    %349 = arith.mulf %342, %348 : vector<1x32xf32>
    %350 = vector.extract_strided_slice %328 {offsets = [1, 0], sizes = [1, 128], strides = [1, 1]} : vector<8x128xf32> to vector<1x128xf32>
    %cst_61 = arith.constant dense<0.000000e+00> : vector<1x128xf32>
    %351 = tpu.matmul %349, %324, %cst_61 {dimension_numbers = #tpu.dot_dimension_numbers<[1], [0], [0], [1], [0, 0, 1, 1], [], []>} : vector<1x32xf32>, vector<32x128xf32>, vector<1x128xf32> -> vector<1x128xf32>
    %352 = arith.addf %350, %351 : vector<1x128xf32>
    %353 = vector.extract_strided_slice %352 {offsets = [0, 0], sizes = [1, 96], strides = [1, 1]} : vector<1x128xf32> to vector<1x96xf32>
    %354 = arith.negf %353 : vector<1x96xf32>
    %355 = math.exp %354 : vector<1x96xf32>
    %cst_62 = arith.constant 1.000000e+00 : f32
    %356 = vector.broadcast %cst_62 : f32 to vector<1x96xf32>
    %357 = arith.addf %356, %355 : vector<1x96xf32>
    %358 = arith.divf %356, %357 : vector<1x96xf32>
    %359 = vector.extract_strided_slice %358 {offsets = [0, 0], sizes = [1, 32], strides = [1, 1]} : vector<1x96xf32> to vector<1x32xf32>
    %360 = vector.extract_strided_slice %358 {offsets = [0, 32], sizes = [1, 32], strides = [1, 1]} : vector<1x96xf32> to vector<1x32xf32>
    %361 = vector.extract_strided_slice %358 {offsets = [0, 64], sizes = [1, 32], strides = [1, 1]} : vector<1x96xf32> to vector<1x32xf32>
    %362 = vector.extract_strided_slice %352 {offsets = [0, 96], sizes = [1, 32], strides = [1, 1]} : vector<1x128xf32> to vector<1x32xf32>
    %363 = math.tanh %362 : vector<1x32xf32>
    %364 = arith.mulf %360, %347 : vector<1x32xf32>
    %365 = arith.mulf %359, %363 : vector<1x32xf32>
    %366 = arith.addf %364, %365 : vector<1x32xf32>
    %367 = math.tanh %366 : vector<1x32xf32>
    %368 = arith.mulf %361, %367 : vector<1x32xf32>
    %369 = vector.extract_strided_slice %328 {offsets = [2, 0], sizes = [1, 128], strides = [1, 1]} : vector<8x128xf32> to vector<1x128xf32>
    %cst_63 = arith.constant dense<0.000000e+00> : vector<1x128xf32>
    %370 = tpu.matmul %368, %324, %cst_63 {dimension_numbers = #tpu.dot_dimension_numbers<[1], [0], [0], [1], [0, 0, 1, 1], [], []>} : vector<1x32xf32>, vector<32x128xf32>, vector<1x128xf32> -> vector<1x128xf32>
    %371 = arith.addf %369, %370 : vector<1x128xf32>
    %372 = vector.extract_strided_slice %371 {offsets = [0, 0], sizes = [1, 96], strides = [1, 1]} : vector<1x128xf32> to vector<1x96xf32>
    %373 = arith.negf %372 : vector<1x96xf32>
    %374 = math.exp %373 : vector<1x96xf32>
    %cst_64 = arith.constant 1.000000e+00 : f32
    %375 = vector.broadcast %cst_64 : f32 to vector<1x96xf32>
    %376 = arith.addf %375, %374 : vector<1x96xf32>
    %377 = arith.divf %375, %376 : vector<1x96xf32>
    %378 = vector.extract_strided_slice %377 {offsets = [0, 0], sizes = [1, 32], strides = [1, 1]} : vector<1x96xf32> to vector<1x32xf32>
    %379 = vector.extract_strided_slice %377 {offsets = [0, 32], sizes = [1, 32], strides = [1, 1]} : vector<1x96xf32> to vector<1x32xf32>
    %380 = vector.extract_strided_slice %377 {offsets = [0, 64], sizes = [1, 32], strides = [1, 1]} : vector<1x96xf32> to vector<1x32xf32>
    %381 = vector.extract_strided_slice %371 {offsets = [0, 96], sizes = [1, 32], strides = [1, 1]} : vector<1x128xf32> to vector<1x32xf32>
    %382 = math.tanh %381 : vector<1x32xf32>
    %383 = arith.mulf %379, %366 : vector<1x32xf32>
    %384 = arith.mulf %378, %382 : vector<1x32xf32>
    %385 = arith.addf %383, %384 : vector<1x32xf32>
    %386 = math.tanh %385 : vector<1x32xf32>
    %387 = arith.mulf %380, %386 : vector<1x32xf32>
    %388 = vector.extract_strided_slice %328 {offsets = [3, 0], sizes = [1, 128], strides = [1, 1]} : vector<8x128xf32> to vector<1x128xf32>
    %cst_65 = arith.constant dense<0.000000e+00> : vector<1x128xf32>
    %389 = tpu.matmul %387, %324, %cst_65 {dimension_numbers = #tpu.dot_dimension_numbers<[1], [0], [0], [1], [0, 0, 1, 1], [], []>} : vector<1x32xf32>, vector<32x128xf32>, vector<1x128xf32> -> vector<1x128xf32>
    %390 = arith.addf %388, %389 : vector<1x128xf32>
    %391 = vector.extract_strided_slice %390 {offsets = [0, 0], sizes = [1, 96], strides = [1, 1]} : vector<1x128xf32> to vector<1x96xf32>
    %392 = arith.negf %391 : vector<1x96xf32>
    %393 = math.exp %392 : vector<1x96xf32>
    %cst_66 = arith.constant 1.000000e+00 : f32
    %394 = vector.broadcast %cst_66 : f32 to vector<1x96xf32>
    %395 = arith.addf %394, %393 : vector<1x96xf32>
    %396 = arith.divf %394, %395 : vector<1x96xf32>
    %397 = vector.extract_strided_slice %396 {offsets = [0, 0], sizes = [1, 32], strides = [1, 1]} : vector<1x96xf32> to vector<1x32xf32>
    %398 = vector.extract_strided_slice %396 {offsets = [0, 32], sizes = [1, 32], strides = [1, 1]} : vector<1x96xf32> to vector<1x32xf32>
    %399 = vector.extract_strided_slice %396 {offsets = [0, 64], sizes = [1, 32], strides = [1, 1]} : vector<1x96xf32> to vector<1x32xf32>
    %400 = vector.extract_strided_slice %390 {offsets = [0, 96], sizes = [1, 32], strides = [1, 1]} : vector<1x128xf32> to vector<1x32xf32>
    %401 = math.tanh %400 : vector<1x32xf32>
    %402 = arith.mulf %398, %385 : vector<1x32xf32>
    %403 = arith.mulf %397, %401 : vector<1x32xf32>
    %404 = arith.addf %402, %403 : vector<1x32xf32>
    %405 = math.tanh %404 : vector<1x32xf32>
    %406 = arith.mulf %399, %405 : vector<1x32xf32>
    %407 = vector.extract_strided_slice %328 {offsets = [4, 0], sizes = [1, 128], strides = [1, 1]} : vector<8x128xf32> to vector<1x128xf32>
    %cst_67 = arith.constant dense<0.000000e+00> : vector<1x128xf32>
    %408 = tpu.matmul %406, %324, %cst_67 {dimension_numbers = #tpu.dot_dimension_numbers<[1], [0], [0], [1], [0, 0, 1, 1], [], []>} : vector<1x32xf32>, vector<32x128xf32>, vector<1x128xf32> -> vector<1x128xf32>
    %409 = arith.addf %407, %408 : vector<1x128xf32>
    %410 = vector.extract_strided_slice %409 {offsets = [0, 0], sizes = [1, 96], strides = [1, 1]} : vector<1x128xf32> to vector<1x96xf32>
    %411 = arith.negf %410 : vector<1x96xf32>
    %412 = math.exp %411 : vector<1x96xf32>
    %cst_68 = arith.constant 1.000000e+00 : f32
    %413 = vector.broadcast %cst_68 : f32 to vector<1x96xf32>
    %414 = arith.addf %413, %412 : vector<1x96xf32>
    %415 = arith.divf %413, %414 : vector<1x96xf32>
    %416 = vector.extract_strided_slice %415 {offsets = [0, 0], sizes = [1, 32], strides = [1, 1]} : vector<1x96xf32> to vector<1x32xf32>
    %417 = vector.extract_strided_slice %415 {offsets = [0, 32], sizes = [1, 32], strides = [1, 1]} : vector<1x96xf32> to vector<1x32xf32>
    %418 = vector.extract_strided_slice %415 {offsets = [0, 64], sizes = [1, 32], strides = [1, 1]} : vector<1x96xf32> to vector<1x32xf32>
    %419 = vector.extract_strided_slice %409 {offsets = [0, 96], sizes = [1, 32], strides = [1, 1]} : vector<1x128xf32> to vector<1x32xf32>
    %420 = math.tanh %419 : vector<1x32xf32>
    %421 = arith.mulf %417, %404 : vector<1x32xf32>
    %422 = arith.mulf %416, %420 : vector<1x32xf32>
    %423 = arith.addf %421, %422 : vector<1x32xf32>
    %424 = math.tanh %423 : vector<1x32xf32>
    %425 = arith.mulf %418, %424 : vector<1x32xf32>
    %426 = vector.extract_strided_slice %328 {offsets = [5, 0], sizes = [1, 128], strides = [1, 1]} : vector<8x128xf32> to vector<1x128xf32>
    %cst_69 = arith.constant dense<0.000000e+00> : vector<1x128xf32>
    %427 = tpu.matmul %425, %324, %cst_69 {dimension_numbers = #tpu.dot_dimension_numbers<[1], [0], [0], [1], [0, 0, 1, 1], [], []>} : vector<1x32xf32>, vector<32x128xf32>, vector<1x128xf32> -> vector<1x128xf32>
    %428 = arith.addf %426, %427 : vector<1x128xf32>
    %429 = vector.extract_strided_slice %428 {offsets = [0, 0], sizes = [1, 96], strides = [1, 1]} : vector<1x128xf32> to vector<1x96xf32>
    %430 = arith.negf %429 : vector<1x96xf32>
    %431 = math.exp %430 : vector<1x96xf32>
    %cst_70 = arith.constant 1.000000e+00 : f32
    %432 = vector.broadcast %cst_70 : f32 to vector<1x96xf32>
    %433 = arith.addf %432, %431 : vector<1x96xf32>
    %434 = arith.divf %432, %433 : vector<1x96xf32>
    %435 = vector.extract_strided_slice %434 {offsets = [0, 0], sizes = [1, 32], strides = [1, 1]} : vector<1x96xf32> to vector<1x32xf32>
    %436 = vector.extract_strided_slice %434 {offsets = [0, 32], sizes = [1, 32], strides = [1, 1]} : vector<1x96xf32> to vector<1x32xf32>
    %437 = vector.extract_strided_slice %434 {offsets = [0, 64], sizes = [1, 32], strides = [1, 1]} : vector<1x96xf32> to vector<1x32xf32>
    %438 = vector.extract_strided_slice %428 {offsets = [0, 96], sizes = [1, 32], strides = [1, 1]} : vector<1x128xf32> to vector<1x32xf32>
    %439 = math.tanh %438 : vector<1x32xf32>
    %440 = arith.mulf %436, %423 : vector<1x32xf32>
    %441 = arith.mulf %435, %439 : vector<1x32xf32>
    %442 = arith.addf %440, %441 : vector<1x32xf32>
    %443 = math.tanh %442 : vector<1x32xf32>
    %444 = arith.mulf %437, %443 : vector<1x32xf32>
    %445 = vector.extract_strided_slice %328 {offsets = [6, 0], sizes = [1, 128], strides = [1, 1]} : vector<8x128xf32> to vector<1x128xf32>
    %cst_71 = arith.constant dense<0.000000e+00> : vector<1x128xf32>
    %446 = tpu.matmul %444, %324, %cst_71 {dimension_numbers = #tpu.dot_dimension_numbers<[1], [0], [0], [1], [0, 0, 1, 1], [], []>} : vector<1x32xf32>, vector<32x128xf32>, vector<1x128xf32> -> vector<1x128xf32>
    %447 = arith.addf %445, %446 : vector<1x128xf32>
    %448 = vector.extract_strided_slice %447 {offsets = [0, 0], sizes = [1, 96], strides = [1, 1]} : vector<1x128xf32> to vector<1x96xf32>
    %449 = arith.negf %448 : vector<1x96xf32>
    %450 = math.exp %449 : vector<1x96xf32>
    %cst_72 = arith.constant 1.000000e+00 : f32
    %451 = vector.broadcast %cst_72 : f32 to vector<1x96xf32>
    %452 = arith.addf %451, %450 : vector<1x96xf32>
    %453 = arith.divf %451, %452 : vector<1x96xf32>
    %454 = vector.extract_strided_slice %453 {offsets = [0, 0], sizes = [1, 32], strides = [1, 1]} : vector<1x96xf32> to vector<1x32xf32>
    %455 = vector.extract_strided_slice %453 {offsets = [0, 32], sizes = [1, 32], strides = [1, 1]} : vector<1x96xf32> to vector<1x32xf32>
    %456 = vector.extract_strided_slice %453 {offsets = [0, 64], sizes = [1, 32], strides = [1, 1]} : vector<1x96xf32> to vector<1x32xf32>
    %457 = vector.extract_strided_slice %447 {offsets = [0, 96], sizes = [1, 32], strides = [1, 1]} : vector<1x128xf32> to vector<1x32xf32>
    %458 = math.tanh %457 : vector<1x32xf32>
    %459 = arith.mulf %455, %442 : vector<1x32xf32>
    %460 = arith.mulf %454, %458 : vector<1x32xf32>
    %461 = arith.addf %459, %460 : vector<1x32xf32>
    %462 = math.tanh %461 : vector<1x32xf32>
    %463 = arith.mulf %456, %462 : vector<1x32xf32>
    %464 = vector.extract_strided_slice %328 {offsets = [7, 0], sizes = [1, 128], strides = [1, 1]} : vector<8x128xf32> to vector<1x128xf32>
    %cst_73 = arith.constant dense<0.000000e+00> : vector<1x128xf32>
    %465 = tpu.matmul %463, %324, %cst_73 {dimension_numbers = #tpu.dot_dimension_numbers<[1], [0], [0], [1], [0, 0, 1, 1], [], []>} : vector<1x32xf32>, vector<32x128xf32>, vector<1x128xf32> -> vector<1x128xf32>
    %466 = arith.addf %464, %465 : vector<1x128xf32>
    %467 = vector.extract_strided_slice %466 {offsets = [0, 0], sizes = [1, 96], strides = [1, 1]} : vector<1x128xf32> to vector<1x96xf32>
    %468 = arith.negf %467 : vector<1x96xf32>
    %469 = math.exp %468 : vector<1x96xf32>
    %cst_74 = arith.constant 1.000000e+00 : f32
    %470 = vector.broadcast %cst_74 : f32 to vector<1x96xf32>
    %471 = arith.addf %470, %469 : vector<1x96xf32>
    %472 = arith.divf %470, %471 : vector<1x96xf32>
    %473 = vector.extract_strided_slice %472 {offsets = [0, 0], sizes = [1, 32], strides = [1, 1]} : vector<1x96xf32> to vector<1x32xf32>
    %474 = vector.extract_strided_slice %472 {offsets = [0, 32], sizes = [1, 32], strides = [1, 1]} : vector<1x96xf32> to vector<1x32xf32>
    %475 = vector.extract_strided_slice %472 {offsets = [0, 64], sizes = [1, 32], strides = [1, 1]} : vector<1x96xf32> to vector<1x32xf32>
    %476 = vector.extract_strided_slice %466 {offsets = [0, 96], sizes = [1, 32], strides = [1, 1]} : vector<1x128xf32> to vector<1x32xf32>
    %477 = math.tanh %476 : vector<1x32xf32>
    %478 = arith.mulf %474, %461 : vector<1x32xf32>
    %479 = arith.mulf %473, %477 : vector<1x32xf32>
    %480 = arith.addf %478, %479 : vector<1x32xf32>
    %481 = math.tanh %480 : vector<1x32xf32>
    %482 = arith.mulf %475, %481 : vector<1x32xf32>
    %483 = tpu.concatenate %349, %368, %387, %406, %425, %444, %463, %482 in 0 : vector<1x32xf32>, vector<1x32xf32>, vector<1x32xf32>, vector<1x32xf32>, vector<1x32xf32>, vector<1x32xf32>, vector<1x32xf32>, vector<1x32xf32> -> vector<8x32xf32>
    %cst_75 = arith.constant 0.000000e+00 : f32
    %484 = vector.broadcast %cst_75 : f32 to vector<8x32xf32>
    %485 = arith.maximumf %483, %484 : vector<8x32xf32>
    %c0_76 = arith.constant 0 : index
    %c0_77 = arith.constant 0 : index
    %486 = vector.load %arg10[%c0_76, %c0_77] : memref<32x4xf32, #tpu.memory_space<vmem>>, vector<32x4xf32>
    %cst_78 = arith.constant dense<0.000000e+00> : vector<8x4xf32>
    %487 = tpu.matmul %485, %486, %cst_78 {dimension_numbers = #tpu.dot_dimension_numbers<[1], [0], [0], [1], [0, 0, 1, 1], [], []>} : vector<8x32xf32>, vector<32x4xf32>, vector<8x4xf32> -> vector<8x4xf32>
    %c0_79 = arith.constant 0 : index
    %c0_80 = arith.constant 0 : index
    %488 = vector.load %arg11[%c0_79, %c0_80] : memref<1x4xf32, #tpu.memory_space<vmem>>, vector<1x4xf32>
    %489 = vector.broadcast %488 : vector<1x4xf32> to vector<8x4xf32>
    %490 = arith.addf %487, %489 : vector<8x4xf32>
    %c0_81 = arith.constant 0 : index
    %c0_82 = arith.constant 0 : index
    %491 = vector.load %arg12[%c0_81, %c0_82] : memref<8x4xf32, #tpu.memory_space<vmem>>, vector<8x4xf32>
    tpu.vector_store %arg12[%c0_81, %c0_82], %490 {strides = array<i32>} : memref<8x4xf32, #tpu.memory_space<vmem>>, vector<8x4xf32>,
    return
  }
}

</mosaic_0001>

<bundles_post_ra>
// kernel: tpu_custom_call.1
= control target key start
LH: loop header
LB: loop body
LE: loop exit
PB: predicated region body
PF: predicated region fallthrough
CT: control target
= control target key end

     0   :  { %17 = vsyncpa [#allocation3], 0  ;;  %s4501_s0 = inlined_call_operand.hbm [shape: f32[8,16], index: 0, kind: input, shape index: {}]   ;;  %s4502_s1 = inlined_call_operand.hbm [shape: f32[16,128], index: 1, kind: input, shape index: {}]   ;;  %s4503_s2 = inlined_call_operand.vmem [shape: f32[32,128], index: 2, kind: input, shape index: {}]   ;;  %s4504_s3 = inlined_call_operand.vmem [shape: f32[1,128], index: 3, kind: input, shape index: {}]   ;;  %s4505_s4 = inlined_call_operand.hbm [shape: f32[32,128], index: 4, kind: input, shape index: {}]   ;;  %s4506_s5 = inlined_call_operand.hbm [shape: f32[32,128], index: 5, kind: input, shape index: {}]   ;;  %s4507_s6 = inlined_call_operand.vmem [shape: f32[1,128], index: 6, kind: input, shape index: {}]   ;;  %s4508_s7 = inlined_call_operand.hbm [shape: f32[32,128], index: 7, kind: input, shape index: {}]   ;;  %s4509_s8 = inlined_call_operand.hbm [shape: f32[32,128], index: 8, kind: input, shape index: {}]   ;;  %s4510_s9 = inlined_call_operand.vmem [shape: f32[1,128], index: 9, kind: input, shape index: {}]   ;;  %s4511_s10 = inlined_call_operand.vmem [shape: f32[32,4], index: 10, kind: input, shape index: {}]   ;;  %s4512_s11 = inlined_call_operand.vmem [shape: f32[1,4], index: 11, kind: input, shape index: {}]   ;;  %s4513_s12 = inlined_call_operand.vmem [shape: f32[8,4], index: 12, kind: output, shape index: {}]  }
   0x1   :  { %18 = vsyncpa [#allocation5], 0 }
   0x2   :  { %19 = vsyncpa [#allocation8], 0 }
   0x3   :  { %20 = vsyncpa [#allocation11], 0  ;;  %s3874_s21 = smov [#allocation4]  }
   0x4   :  { %s36_s22 = sshll.u32 %s3874_s21, 4  ;;  %s37_s22 = int_to_ptr.vmem [resolvable:$true] %s36_s22 }
   0x5   :  { %s3754_s23 = scalar_lea.vmem %s37_s22, 256  ;;  %p3759_p1 = scmp.lt.s32.totalorder %s37_s22, %s37_s22 }
   0x6   :  { %p3755_p0 = scmp.ne.s32.totalorder %s37_s22, %s3754_s23  ;;  %p3760_p2 = scmp.lt.s32.totalorder %s3754_s23, %s3754_s23 }
   0x8   :  { %p3761_p3 = por %p3760_p2, %p3759_p1 }
   0xa   :  { %p3762_p4 = pnand %p3761_p3, %p3755_p0 }
   0xc   :  { %3765 = shalt.err (!%p3762_p4)
}
   0xd   :  { %s3875_s24 = smov 128   ;;  %s3876_s25 = smov 8  }
   0xe   :  { %42 = dma.hbm_to_vmem [thread:$0]  %s4502_s1, 256, %s37_s22, [#allocation5], %s3875_s24, %s3875_s24, %s3876_s25  }
   0xf   :  { %s3877_s28 = smov [#allocation7]   ;;  %s3878_s30 = smov [#allocation2]  }
  0x10   :  { %s64_s29 = sshll.u32 %s3877_s28, 4  ;;  %s27_s13 = sshll.u32 %s3878_s30, 4  ;;  %s65_s29 = int_to_ptr.vmem [resolvable:$true] %s64_s29  ;;  %s28_s13 = int_to_ptr.vmem [resolvable:$true] %s27_s13 }
  0x11   :  { %s3774_s14 = scalar_lea.vmem %s65_s29, 512  ;;  %p3779_p6 = scmp.lt.s32.totalorder %s65_s29, %s65_s29 }
  0x12   :  { %p3775_p5 = scmp.ne.s32.totalorder %s65_s29, %s3774_s14  ;;  %p3780_p7 = scmp.lt.s32.totalorder %s3774_s14, %s3774_s14 }
  0x14   :  { %p3781_p8 = por %p3780_p7, %p3779_p6 }
  0x16   :  { %p3782_p9 = pnand %p3781_p8, %p3775_p5 }
  0x18   :  { %3785 = shalt.err (!%p3782_p9)
}
  0x19   :  { %70 = dma.hbm_to_vmem [thread:$0]  %s4506_s5, 512, %s65_s29, [#allocation8], %s3875_s24, %s3875_s24, %s3876_s25  }
  0x1a   :  { %s3794_s1 = scalar_lea.vmem %s28_s13, 128  ;;  %p3799_p11 = scmp.lt.s32.totalorder %s28_s13, %s28_s13 }
  0x1b   :  { %p3795_p10 = scmp.ne.s32.totalorder %s28_s13, %s3794_s1  ;;  %p3800_p12 = scmp.lt.s32.totalorder %s3794_s1, %s3794_s1 }
  0x1d   :  { %p3801_p13 = por %p3800_p12, %p3799_p11 }
  0x1f   :  { %p3802_p0 = pnand %p3801_p13, %p3795_p10 }
  0x21   :  { %3805 = shalt.err (!%p3802_p0)
}
  0x22   :  { %30 = dma.hbm_to_vmem [thread:$0]  %s4501_s0, 128, %s28_s13, [#allocation3]  }
  0x23   :  { %s3879_s19 = smov [#allocation6]   ;;  %s3880_s21 = smov [#allocation9]  }
  0x24   :  { %s52_s20 = sshll.u32 %s3879_s19, 4  ;;  %s78_s22 = sshll.u32 %s3880_s21, 4  ;;  %s53_s20 = int_to_ptr.vmem [resolvable:$true] %s52_s20  ;;  %s79_s22 = int_to_ptr.vmem [resolvable:$true] %s78_s22 }
  0x25   :  { %s3814_s23 = scalar_lea.vmem %s53_s20, 512  ;;  %p3819_p2 = scmp.lt.s32.totalorder %s53_s20, %s53_s20 }
  0x26   :  { %p3815_p1 = scmp.ne.s32.totalorder %s53_s20, %s3814_s23  ;;  %p3820_p3 = scmp.lt.s32.totalorder %s3814_s23, %s3814_s23 }
  0x28   :  { %p3821_p4 = por %p3820_p3, %p3819_p2 }
  0x2a   :  { %p3822_p5 = pnand %p3821_p4, %p3815_p1 }
  0x2c   :  { %3825 = shalt.err (!%p3822_p5)
}
  0x2d   :  { %58 = dma.hbm_to_vmem [thread:$0]  %s4505_s4, 512, %s53_s20, [#allocation5], %s3875_s24, %s3875_s24, %s3876_s25  }
  0x2e   :  { %s3834_s0 = scalar_lea.vmem %s79_s22, 512  ;;  %p3839_p7 = scmp.lt.s32.totalorder %s79_s22, %s79_s22 }
  0x2f   :  { %p3835_p6 = scmp.ne.s32.totalorder %s79_s22, %s3834_s0  ;;  %p3840_p8 = scmp.lt.s32.totalorder %s3834_s0, %s3834_s0 }
  0x31   :  { %p3841_p9 = por %p3840_p8, %p3839_p7 }
  0x33   :  { %p3842_p10 = pnand %p3841_p9, %p3835_p6 }
  0x35   :  { %3845 = shalt.err (!%p3842_p10)
}
  0x36   :  { %84 = dma.hbm_to_vmem [thread:$0]  %s4508_s7, 512, %s79_s22, [#allocation8], %s3875_s24, %s3875_s24, %s3876_s25  }
  0x37   :  { %s3881_s29 = smov [#allocation10]  }
  0x38   :  { %s90_s30 = sshll.u32 %s3881_s29, 4  ;;  %s91_s30 = int_to_ptr.vmem [resolvable:$true] %s90_s30 }
  0x39   :  { %s3854_s13 = scalar_lea.vmem %s91_s30, 512  ;;  %p3859_p12 = scmp.lt.s32.totalorder %s91_s30, %s91_s30 }
  0x3a   :  { %p3855_p11 = scmp.ne.s32.totalorder %s91_s30, %s3854_s13  ;;  %p3860_p13 = scmp.lt.s32.totalorder %s3854_s13, %s3854_s13 }
  0x3c   :  { %p3861_p0 = por %p3860_p13, %p3859_p12 }
  0x3e   :  { %p3862_p1 = pnand %p3861_p0, %p3855_p11 }
  0x40   :  { %3865 = shalt.err (!%p3862_p1)
}
  0x41   :  { %96 = dma.hbm_to_vmem [thread:$0]  %s4509_s8, 512, %s91_s30, [#allocation11], %s3875_s24, %s3875_s24, %s3876_s25  }
  0x42   :  { %3866 = dma.done.wait [#allocation3], 128  }
  0x43   :  { %3867 = vsyncadd [#allocation3], 4294967168 }
  0x44   :  { %3868 = dma.done.wait [#allocation5], 768  }
  0x45   :  { %3869 = vsyncadd [#allocation5], 4294966528 }
  0x46   :  { %3870 = dma.done.wait [#allocation8], 1024  }
  0x47   :  { %3871 = vsyncadd [#allocation8], 4294966272 }
  0x48   :  { %3872 = dma.done.wait [#allocation11], 512  }
  0x49   :  { %3873 = vsyncadd [#allocation11], 4294966784  ;;  %v3882_v0 = vmov 0.0   ;;  %vm3883_vm0 = vmmov 0   ;;  %v123_v1 = vld [vmem:[#allocation4 + $0x8] sm:$0xff]  ;;  %v3993_v2 = vld [vmem:[%s4503_s2 + $0x18] sm:$0xff] }
  0x4a   :  { %3238 = vmatprep.subr.mxu0 %v3882_v0  ;;  %3245 = vmatprep.subr.mxu1 %v3882_v0  ;;  %v122_v3 = vld [vmem:[#allocation4] sm:$0xff]  ;;  %v3999_v4 = vld [vmem:[%s4503_s2 + $0x10] sm:$0xff]  ;;  %v121_v5 = vld [vmem:[#allocation2] sm:$0xff]  ;;  %vm135_vm1 = vcmask 130048   ;;  %s3884_s19 = smov 32   ;;  %vm209_vm2 = vcmask 261120  }
  0x4b   :  { %3242 = vmatprep.mubr.msk.f32.mxu0 %vm3883_vm0, %v3882_v0  ;;  %3253 = vmatprep.mubr.msk.f32.mxu1 %vm3883_vm0, %v3882_v0  ;;  %v4006_v6 = vld [vmem:[%s4503_s2 + $0x8] sm:$0xff]  ;;  %v4013_v7 = vld [vmem:[%s4503_s2] sm:$0xff]  ;;  %vm1056_vm3 = vcmask 1040384   ;;  %vm1058_vm4 = vcmask 1041408   ;;  %vm1060_vm5 = vcmask 1042432   ;;  %vm1062_vm6 = vcmask 1043456  }
  0x4c   :  { %3239 = vmatpush3.msra.mxu0 %v123_v1  ;;  %3246 = vmatpush3.msra.mxu1 %v3993_v2  ;;  %v3047_v8 = vld [vmem:[%s4504_s3] ss:$0 sm:$0xff]  ;;  %s3885_s3 = smov 64   ;;  %vm1064_vm7 = vcmask 1044480   ;;  %vm1066_vm8 = vcmask 1045504   ;;  %vm1068_vm9 = vcmask 1046528  }
  0x4d   :  { %3240 = vmatprep.subr.mxu0 %v3882_v0  ;;  %3247 = vmatprep.subr.mxu1 %v3882_v0  ;;  %vm3037_vm10 = vcmask 31744  }
  0x4e   :  { %3241 = vmatpush3.msra.mxu0 %v122_v3  ;;  %3248 = vmatpush3.msra.mxu1 %v3999_v4 }
  0x4f   :  { %3243 = vmatmul.mubr.msk.f32.vlgmr.msra.gmra.mxu0 %vm135_vm1, %v121_v5  ;;  %3249 = vmatprep.subr.mxu1 %v3882_v0 }
  0x50   :  { %3250 = vmatpush3.msra.mxu1 %v4006_v6  ;;  %3256 = vmatprep.subr.mxu0 %v3882_v0 }
  0x51   :  { %3251 = vmatprep.subr.mxu1 %v3882_v0  ;;  %3257 = vmatpush3.msra.mxu0 %v3993_v2 }
  0x52   :  { %3252 = vmatpush3.msra.mxu1 %v4013_v7  ;;  %3258 = vmatprep.subr.mxu0 %v3882_v0 }
  0x53   :  { %3254 = vmatmul.mubr.f32.vlgmr.msra.gmra.mxu1 %v3882_v0  ;;  %3259 = vmatpush3.msra.mxu0 %v3999_v4 }
  0x54   :  { %3260 = vmatprep.subr.mxu0 %v3882_v0  ;;  %3264 = vmatprep.mubr.msk.f32.mxu0 %vm3883_vm0, %v3882_v0 }
  0x55   :  { %3261 = vmatpush3.msra.mxu0 %v4006_v6  ;;  %3267 = vmatprep.subr.mxu1 %v3882_v0 }
  0x56   :  { %3262 = vmatprep.subr.mxu0 %v3882_v0  ;;  %3268 = vmatpush3.msra.mxu1 %v3993_v2 }
  0x57   :  { %3263 = vmatpush3.msra.mxu0 %v4013_v7  ;;  %3269 = vmatprep.subr.mxu1 %v3882_v0 }
  0x58   :  { %3270 = vmatpush3.msra.mxu1 %v3999_v4  ;;  %3275 = vmatprep.mubr.msk.f32.mxu1 %vm3883_vm0, %v3882_v0 }
  0x59   :  { %3271 = vmatprep.subr.mxu1 %v3882_v0  ;;  %3278 = vmatprep.subr.mxu0 %v3882_v0 }
  0x5a   :  { %3272 = vmatpush3.msra.mxu1 %v4006_v6 }
  0x5b   :  { %3273 = vmatprep.subr.mxu1 %v3882_v0 }
  0x5c   :  { %3274 = vmatpush3.msra.mxu1 %v4013_v7 }
  0x5d   :  { %3289 = vmatprep.subr.mxu1 %v3882_v0 }
 0x10f   :  { %v205_v9 = vpop.f32.mrf.mxu0 }
 0x110   :  { %v4044_v10 = vadd.f32 %v3047_v8, %v205_v9 }
 0x111   :  { %v3244_v11 = vpop.f32.mrf.mxu0 }
 0x113   :  { %v279_v12 = vpop.f32.mrf.mxu1 }
 0x114   :  { %v283_v13 = vadd.f32 %v279_v12, %v4044_v10 }
 0x115   :  { %v3255_v14 = vpop.f32.mrf.mxu1 }
 0x116   :  { %3554 = vtanh.f32 %v283_v13  ;;  %v3049_v16 = vmul.f32 -1.442695, %v283_v13 }
 0x118   :  { %3556 = vpow2.f32 %v3049_v16 }
 0x123   :  { %v3555_v15 = vpop.eup %3554 }
 0x124   :  { %293 = vrot.lane.b32.xlu0 %v3555_v15, %s3884_s19 }
 0x125   :  { %v3557_v17 = vpop.eup %3556 }
 0x126   :  { %v287_v18 = vadd.f32 1.0, %v3557_v17 }
 0x128   :  { %3558 = vrcp.f32 %v287_v18 }
 0x135   :  { %v3559_v19 = vpop.eup %3558 }
 0x136   :  { %v291_v22 = vmul.f32 0.0, %v3559_v19 }
 0x196   :  { %v294_v20 = vpop.permute.xlu0 %293 }
 0x197   :  { %v296_v21 = vmul.f32 %v3559_v19, %v294_v20 }
 0x199   :  { %298 = vrot.lane.b32.xlu0 %v296_v21, %s3884_s19 }
 0x20b   :  { %v299_v23 = vpop.permute.xlu0 %298 }
 0x20c   :  { %v301_v24 = vadd.f32 %v299_v23, %v291_v22 }
 0x20e   :  { %3560 = vtanh.f32 %v301_v24  ;;  %v395_v40 = vrot.slane %v301_v24, 7 }
 0x21b   :  { %v3561_v25 = vpop.eup %3560 }
 0x21c   :  { %304 = vrot.lane.b32.xlu1 %v3561_v25, %s3884_s19 }
 0x28e   :  { %v305_v26 = vpop.permute.xlu1 %304 }
 0x28f   :  { %v4050_v27 = vmul.f32 %v3559_v19, %v305_v26 }
 0x291   :  { %309 = vrot.lane.b32.xlu1 %v4050_v27, %s3885_s3 }
 0x303   :  { %v310_v28 = vpop.permute.xlu1 %309 }
 0x304   :  { %3265 = vmatmul.mubr.msk.f32.vlgmr.msra.gmra.mxu0 %vm209_vm2, %v310_v28 }
 0x305   :  { %3279 = vmatpush3.msra.mxu0 %v3993_v2  ;;  %3286 = vmatprep.mubr.msk.f32.mxu0 %vm3883_vm0, %v3882_v0 }
 0x306   :  { %3280 = vmatprep.subr.mxu0 %v3882_v0 }
 0x307   :  { %3281 = vmatpush3.msra.mxu0 %v3999_v4 }
 0x308   :  { %3282 = vmatprep.subr.mxu0 %v3882_v0 }
 0x309   :  { %3283 = vmatpush3.msra.mxu0 %v4006_v6 }
 0x30a   :  { %3284 = vmatprep.subr.mxu0 %v3882_v0 }
 0x30b   :  { %3285 = vmatpush3.msra.mxu0 %v4013_v7 }
 0x30c   :  { %3300 = vmatprep.subr.mxu0 %v3882_v0 }
 0x3c4   :  { %v379_v29 = vpop.f32.mrf.mxu0 }
 0x3c5   :  { %v384_v30 = vrot.slane %v379_v29, 7 }
 0x3c6   :  { %v3266_v31 = vpop.f32.mrf.mxu0 }
 0x3c7   :  { %v386_v32 = vadd.f32 %v384_v30, %v4044_v10 }
 0x3c9   :  { %3562 = vtanh.f32 %v386_v32  ;;  %v3051_v34 = vmul.f32 -1.442695, %v386_v32 }
 0x3cb   :  { %3564 = vpow2.f32 %v3051_v34 }
 0x3d6   :  { %v3563_v33 = vpop.eup %3562 }
 0x3d7   :  { %399 = vrot.lane.b32.xlu0 %v3563_v33, %s3884_s19 }
 0x3d8   :  { %v3565_v35 = vpop.eup %3564 }
 0x3d9   :  { %v390_v36 = vadd.f32 1.0, %v3565_v35 }
 0x3db   :  { %3566 = vrcp.f32 %v390_v36 }
 0x3e8   :  { %v3567_v37 = vpop.eup %3566 }
 0x3e9   :  { %v397_v41 = vmul.f32 %v3567_v37, %v395_v40 }
 0x449   :  { %v400_v38 = vpop.permute.xlu0 %399 }
 0x44a   :  { %v402_v39 = vmul.f32 %v3567_v37, %v400_v38 }
 0x44c   :  { %404 = vrot.lane.b32.xlu1 %v402_v39, %s3884_s19 }
 0x4be   :  { %v405_v42 = vpop.permute.xlu1 %404 }
 0x4bf   :  { %v407_v43 = vadd.f32 %v405_v42, %v397_v41 }
 0x4c1   :  { %3568 = vtanh.f32 %v407_v43  ;;  %v502_v60 = vrot.slane %v407_v43, 7 }
 0x4ce   :  { %v3569_v44 = vpop.eup %3568 }
 0x4cf   :  { %410 = vrot.lane.b32.xlu0 %v3569_v44, %s3884_s19 }
 0x541   :  { %v411_v45 = vpop.permute.xlu0 %410 }
 0x542   :  { %v413_v46 = vmul.f32 %v3567_v37, %v411_v45 }
 0x544   :  { %v415_v47 = vrot.slane %v413_v46, 1  ;;  %v1057_v8 = vsel %vm1056_vm3, %v4050_v27, %v413_v46 }
 0x546   :  { %416 = vrot.lane.b32.xlu1 %v415_v47, %s3885_s3 }
 0x5b8   :  { %v417_v48 = vpop.permute.xlu1 %416 }
 0x5b9   :  { %3276 = vmatmul.mubr.msk.f32.vlgmr.msra.gmra.mxu1 %vm209_vm2, %v417_v48 }
 0x5ba   :  { %3290 = vmatpush3.msra.mxu1 %v3993_v2  ;;  %3297 = vmatprep.mubr.msk.f32.mxu1 %vm3883_vm0, %v3882_v0 }
 0x5bb   :  { %3291 = vmatprep.subr.mxu1 %v3882_v0 }
 0x5bc   :  { %3292 = vmatpush3.msra.mxu1 %v3999_v4 }
 0x5bd   :  { %3293 = vmatprep.subr.mxu1 %v3882_v0 }
 0x5be   :  { %3294 = vmatpush3.msra.mxu1 %v4006_v6 }
 0x5bf   :  { %3295 = vmatprep.subr.mxu1 %v3882_v0 }
 0x5c0   :  { %3296 = vmatpush3.msra.mxu1 %v4013_v7 }
 0x5c1   :  { %3311 = vmatprep.subr.mxu1 %v3882_v0 }
 0x679   :  { %v486_v49 = vpop.f32.mrf.mxu1 }
 0x67a   :  { %v491_v50 = vrot.slane %v486_v49, 6 }
 0x67b   :  { %v3277_v51 = vpop.f32.mrf.mxu1 }
 0x67c   :  { %v493_v52 = vadd.f32 %v491_v50, %v4044_v10 }
 0x67e   :  { %3570 = vtanh.f32 %v493_v52  ;;  %v3053_v54 = vmul.f32 -1.442695, %v493_v52 }
 0x680   :  { %3572 = vpow2.f32 %v3053_v54 }
 0x68b   :  { %v3571_v53 = vpop.eup %3570 }
 0x68c   :  { %506 = vrot.lane.b32.xlu0 %v3571_v53, %s3884_s19 }
 0x68d   :  { %v3573_v55 = vpop.eup %3572 }
 0x68e   :  { %v497_v56 = vadd.f32 1.0, %v3573_v55 }
 0x690   :  { %3574 = vrcp.f32 %v497_v56 }
 0x69d   :  { %v3575_v57 = vpop.eup %3574 }
 0x69e   :  { %v504_v61 = vmul.f32 %v3575_v57, %v502_v60 }
 0x6fe   :  { %v507_v58 = vpop.permute.xlu0 %506 }
 0x6ff   :  { %v509_v59 = vmul.f32 %v3575_v57, %v507_v58 }
 0x701   :  { %511 = vrot.lane.b32.xlu1 %v509_v59, %s3884_s19 }
 0x773   :  { %v512_v62 = vpop.permute.xlu1 %511 }
 0x774   :  { %v514_v63 = vadd.f32 %v512_v62, %v504_v61 }
 0x776   :  { %3576 = vtanh.f32 %v514_v63  ;;  %v609_v24 = vrot.slane %v514_v63, 7 }
 0x783   :  { %v3577_v1 = vpop.eup %3576 }
 0x784   :  { %517 = vrot.lane.b32.xlu0 %v3577_v1, %s3884_s19 }
 0x7f6   :  { %v518_v3 = vpop.permute.xlu0 %517 }
 0x7f7   :  { %v520_v5 = vmul.f32 %v3575_v57, %v518_v3 }
 0x7f9   :  { %v522_v9 = vrot.slane %v520_v5, 2  ;;  %v1059_v11 = vsel %vm1058_vm4, %v1057_v8, %v520_v5 }
 0x7fb   :  { %523 = vrot.lane.b32.xlu1 %v522_v9, %s3885_s3 }
 0x86d   :  { %v524_v12 = vpop.permute.xlu1 %523 }
 0x86e   :  { %3287 = vmatmul.mubr.msk.f32.vlgmr.msra.gmra.mxu0 %vm209_vm2, %v524_v12 }
 0x86f   :  { %3301 = vmatpush3.msra.mxu0 %v3993_v2  ;;  %3308 = vmatprep.mubr.msk.f32.mxu0 %vm3883_vm0, %v3882_v0 }
 0x870   :  { %3302 = vmatprep.subr.mxu0 %v3882_v0 }
 0x871   :  { %3303 = vmatpush3.msra.mxu0 %v3999_v4 }
 0x872   :  { %3304 = vmatprep.subr.mxu0 %v3882_v0 }
 0x873   :  { %3305 = vmatpush3.msra.mxu0 %v4006_v6 }
 0x874   :  { %3306 = vmatprep.subr.mxu0 %v3882_v0 }
 0x875   :  { %3307 = vmatpush3.msra.mxu0 %v4013_v7 }
 0x876   :  { %3322 = vmatprep.subr.mxu0 %v3882_v0 }
 0x92e   :  { %v593_v13 = vpop.f32.mrf.mxu0 }
 0x92f   :  { %v598_v14 = vrot.slane %v593_v13, 5 }
 0x930   :  { %v3288_v15 = vpop.f32.mrf.mxu0 }
 0x931   :  { %v600_v16 = vadd.f32 %v598_v14, %v4044_v10 }
 0x933   :  { %3578 = vtanh.f32 %v600_v16  ;;  %v3055_v18 = vmul.f32 -1.442695, %v600_v16 }
 0x935   :  { %3580 = vpow2.f32 %v3055_v18 }
 0x940   :  { %v3579_v17 = vpop.eup %3578 }
 0x941   :  { %613 = vrot.lane.b32.xlu0 %v3579_v17, %s3884_s19 }
 0x942   :  { %v3581_v19 = vpop.eup %3580 }
 0x943   :  { %v604_v20 = vadd.f32 1.0, %v3581_v19 }
 0x945   :  { %3582 = vrcp.f32 %v604_v20 }
 0x952   :  { %v3583_v21 = vpop.eup %3582 }
 0x953   :  { %v611_v25 = vmul.f32 %v3583_v21, %v609_v24 }
 0x9b3   :  { %v614_v22 = vpop.permute.xlu0 %613 }
 0x9b4   :  { %v616_v23 = vmul.f32 %v3583_v21, %v614_v22 }
 0x9b6   :  { %618 = vrot.lane.b32.xlu1 %v616_v23, %s3884_s19 }
 0xa28   :  { %v619_v26 = vpop.permute.xlu1 %618 }
 0xa29   :  { %v621_v27 = vadd.f32 %v619_v26, %v611_v25 }
 0xa2b   :  { %3584 = vtanh.f32 %v621_v27  ;;  %v716_v45 = vrot.slane %v621_v27, 7 }
 0xa38   :  { %v3585_v28 = vpop.eup %3584 }
 0xa39   :  { %624 = vrot.lane.b32.xlu0 %v3585_v28, %s3884_s19 }
 0xaab   :  { %v625_v29 = vpop.permute.xlu0 %624 }
 0xaac   :  { %v627_v30 = vmul.f32 %v3583_v21, %v625_v29 }
 0xaae   :  { %v629_v31 = vrot.slane %v627_v30, 3  ;;  %v1061_v32 = vsel %vm1060_vm5, %v1059_v11, %v627_v30 }
 0xab0   :  { %630 = vrot.lane.b32.xlu1 %v629_v31, %s3885_s3 }
 0xb22   :  { %v631_v33 = vpop.permute.xlu1 %630 }
 0xb23   :  { %3298 = vmatmul.mubr.msk.f32.vlgmr.msra.gmra.mxu1 %vm209_vm2, %v631_v33 }
 0xb24   :  { %3312 = vmatpush3.msra.mxu1 %v3993_v2  ;;  %3319 = vmatprep.mubr.msk.f32.mxu1 %vm3883_vm0, %v3882_v0 }
 0xb25   :  { %3313 = vmatprep.subr.mxu1 %v3882_v0 }
 0xb26   :  { %3314 = vmatpush3.msra.mxu1 %v3999_v4 }
 0xb27   :  { %3315 = vmatprep.subr.mxu1 %v3882_v0 }
 0xb28   :  { %3316 = vmatpush3.msra.mxu1 %v4006_v6 }
 0xb29   :  { %3317 = vmatprep.subr.mxu1 %v3882_v0 }
 0xb2a   :  { %3318 = vmatpush3.msra.mxu1 %v4013_v7 }
 0xb2b   :  { %3333 = vmatprep.subr.mxu1 %v3882_v0 }
 0xbe3   :  { %v700_v34 = vpop.f32.mrf.mxu1 }
 0xbe4   :  { %v705_v35 = vrot.slane %v700_v34, 4 }
 0xbe5   :  { %v3299_v36 = vpop.f32.mrf.mxu1 }
 0xbe6   :  { %v707_v37 = vadd.f32 %v705_v35, %v4044_v10 }
 0xbe8   :  { %3586 = vtanh.f32 %v707_v37  ;;  %v3057_v39 = vmul.f32 -1.442695, %v707_v37 }
 0xbea   :  { %3588 = vpow2.f32 %v3057_v39 }
 0xbf5   :  { %v3587_v38 = vpop.eup %3586 }
 0xbf6   :  { %720 = vrot.lane.b32.xlu0 %v3587_v38, %s3884_s19 }
 0xbf7   :  { %v3589_v40 = vpop.eup %3588 }
 0xbf8   :  { %v711_v41 = vadd.f32 1.0, %v3589_v40 }
 0xbfa   :  { %3590 = vrcp.f32 %v711_v41 }
 0xc07   :  { %v3591_v42 = vpop.eup %3590 }
 0xc08   :  { %v718_v46 = vmul.f32 %v3591_v42, %v716_v45 }
 0xc68   :  { %v721_v43 = vpop.permute.xlu0 %720 }
 0xc69   :  { %v723_v44 = vmul.f32 %v3591_v42, %v721_v43 }
 0xc6b   :  { %725 = vrot.lane.b32.xlu1 %v723_v44, %s3884_s19 }
 0xcdd   :  { %v726_v47 = vpop.permute.xlu1 %725 }
 0xcde   :  { %v728_v48 = vadd.f32 %v726_v47, %v718_v46 }
 0xce0   :  { %3592 = vtanh.f32 %v728_v48 }
 0xced   :  { %v3593_v49 = vpop.eup %3592 }
 0xcee   :  { %731 = vrot.lane.b32.xlu0 %v3593_v49, %s3884_s19 }
 0xd60   :  { %v732_v50 = vpop.permute.xlu0 %731 }
 0xd61   :  { %v734_v51 = vmul.f32 %v3591_v42, %v732_v50  ;;  %v4157_v50 = vld [vmem:[#allocation7 + $0x18] sm:$0xff] }
 0xd63   :  { %v736_v52 = vrot.slane %v734_v51, 4  ;;  %v1063_v53 = vsel %vm1062_vm6, %v1061_v32, %v734_v51  ;;  %v1072_v51 = vld [vmem:[#allocation6 + $0x10] sm:$0xff] }
 0xd65   :  { %737 = vrot.lane.b32.xlu1 %v736_v52, %s3885_s3  ;;  %v4160_v52 = vld [vmem:[#allocation7 + $0x10] sm:$0xff] }
 0xdd7   :  { %v738_v54 = vpop.permute.xlu1 %737 }
 0xdd8   :  { %3309 = vmatmul.mubr.msk.f32.vlgmr.msra.gmra.mxu0 %vm209_vm2, %v738_v54  ;;  %v4164_v54 = vld [vmem:[#allocation7 + $0x8] sm:$0xff] }
 0xdd9   :  { %3323 = vmatpush3.msra.mxu0 %v3993_v2  ;;  %3330 = vmatprep.mubr.msk.f32.mxu0 %vm3883_vm0, %v3882_v0 }
 0xdda   :  { %3324 = vmatprep.subr.mxu0 %v3882_v0 }
 0xddb   :  { %3325 = vmatpush3.msra.mxu0 %v3999_v4 }
 0xddc   :  { %3326 = vmatprep.subr.mxu0 %v3882_v0 }
 0xddd   :  { %3327 = vmatpush3.msra.mxu0 %v4006_v6 }
 0xdde   :  { %3328 = vmatprep.subr.mxu0 %v3882_v0 }
 0xddf   :  { %3329 = vmatpush3.msra.mxu0 %v4013_v7  ;;  %v823_v7 = vrot.slane %v728_v48, 7 }
 0xde0   :  { %3344 = vmatprep.subr.mxu0 %v3882_v0 }
 0xe98   :  { %v807_v55 = vpop.f32.mrf.mxu0 }
 0xe99   :  { %v812_v56 = vrot.slane %v807_v55, 3  ;;  %v1070_v55 = vld [vmem:[#allocation6] sm:$0xff] }
 0xe9a   :  { %v3310_v2 = vpop.f32.mrf.mxu0 }
 0xe9b   :  { %v814_v57 = vadd.f32 %v812_v56, %v4044_v10  ;;  %v4169_v56 = vld [vmem:[#allocation7] sm:$0xff] }
 0xe9d   :  { %3594 = vtanh.f32 %v814_v57  ;;  %v3059_v4 = vmul.f32 -1.442695, %v814_v57 }
 0xe9f   :  { %3596 = vpow2.f32 %v3059_v4 }
 0xeaa   :  { %v3595_v58 = vpop.eup %3594 }
 0xeab   :  { %827 = vrot.lane.b32.xlu0 %v3595_v58, %s3884_s19 }
 0xeac   :  { %v3597_v59 = vpop.eup %3596 }
 0xead   :  { %v818_v60 = vadd.f32 1.0, %v3597_v59 }
 0xeaf   :  { %3598 = vrcp.f32 %v818_v60 }
 0xebc   :  { %v3599_v6 = vpop.eup %3598 }
 0xebd   :  { %v825_v63 = vmul.f32 %v3599_v6, %v823_v7 }
 0xf1d   :  { %v828_v61 = vpop.permute.xlu0 %827 }
 0xf1e   :  { %v830_v62 = vmul.f32 %v3599_v6, %v828_v61  ;;  %v3064_v61 = vld [vmem:[%s4507_s6] ss:$0 sm:$0xff] }
 0xf20   :  { %832 = vrot.lane.b32.xlu1 %v830_v62, %s3884_s19 }
 0xf92   :  { %v833_v1 = vpop.permute.xlu1 %832 }
 0xf93   :  { %v835_v3 = vadd.f32 %v833_v1, %v825_v63 }
 0xf95   :  { %3600 = vtanh.f32 %v835_v3  ;;  %v930_v25 = vrot.slane %v835_v3, 7 }
 0xfa2   :  { %v3601_v5 = vpop.eup %3600 }
 0xfa3   :  { %838 = vrot.lane.b32.xlu0 %v3601_v5, %s3884_s19 }
0x1015   :  { %v839_v8 = vpop.permute.xlu0 %838 }
0x1016   :  { %v841_v9 = vmul.f32 %v3599_v6, %v839_v8 }
0x1018   :  { %v843_v11 = vrot.slane %v841_v9, 5  ;;  %v1065_v12 = vsel %vm1064_vm7, %v1063_v53, %v841_v9  ;;  %v1071_v53 = vld [vmem:[#allocation6 + $0x8] sm:$0xff] }
0x101a   :  { %844 = vrot.lane.b32.xlu1 %v843_v11, %s3885_s3 }
0x108c   :  { %v845_v13 = vpop.permute.xlu1 %844 }
0x108d   :  { %3320 = vmatmul.mubr.msk.f32.vlgmr.msra.gmra.mxu1 %vm209_vm2, %v845_v13 }
0x108e   :  { %3341 = vmatprep.mubr.msk.f32.mxu1 %vm3883_vm0, %v3882_v0 }
0x114d   :  { %v914_v14 = vpop.f32.mrf.mxu1 }
0x114e   :  { %v919_v15 = vrot.slane %v914_v14, 2 }
0x114f   :  { %v3321_v16 = vpop.f32.mrf.mxu1 }
0x1150   :  { %v921_v17 = vadd.f32 %v919_v15, %v4044_v10 }
0x1152   :  { %3602 = vtanh.f32 %v921_v17  ;;  %v3061_v19 = vmul.f32 -1.442695, %v921_v17 }
0x1154   :  { %3604 = vpow2.f32 %v3061_v19 }
0x115f   :  { %v3603_v18 = vpop.eup %3602 }
0x1160   :  { %934 = vrot.lane.b32.xlu0 %v3603_v18, %s3884_s19 }
0x1161   :  { %v3605_v20 = vpop.eup %3604 }
0x1162   :  { %v925_v21 = vadd.f32 1.0, %v3605_v20 }
0x1164   :  { %3606 = vrcp.f32 %v925_v21 }
0x1171   :  { %v3607_v22 = vpop.eup %3606 }
0x1172   :  { %v932_v26 = vmul.f32 %v3607_v22, %v930_v25 }
0x11d2   :  { %v935_v23 = vpop.permute.xlu0 %934 }
0x11d3   :  { %v937_v24 = vmul.f32 %v3607_v22, %v935_v23 }
0x11d5   :  { %939 = vrot.lane.b32.xlu1 %v937_v24, %s3884_s19 }
0x1247   :  { %v940_v27 = vpop.permute.xlu1 %939 }
0x1248   :  { %v942_v28 = vadd.f32 %v940_v27, %v932_v26 }
0x124a   :  { %3608 = vtanh.f32 %v942_v28  ;;  %v1037_v46 = vrot.slane %v942_v28, 7 }
0x1257   :  { %v3609_v29 = vpop.eup %3608 }
0x1258   :  { %945 = vrot.lane.b32.xlu0 %v3609_v29, %s3884_s19 }
0x12ca   :  { %v946_v30 = vpop.permute.xlu0 %945 }
0x12cb   :  { %v948_v31 = vmul.f32 %v3607_v22, %v946_v30 }
0x12cd   :  { %v950_v32 = vrot.slane %v948_v31, 6  ;;  %v4148_v33 = vsel %vm1066_vm8, %v1065_v12, %v948_v31 }
0x12cf   :  { %951 = vrot.lane.b32.xlu1 %v950_v32, %s3885_s3 }
0x1341   :  { %v952_v34 = vpop.permute.xlu1 %951 }
0x1342   :  { %3331 = vmatmul.mubr.msk.f32.vlgmr.msra.gmra.mxu0 %vm209_vm2, %v952_v34 }
0x1343   :  { %3352 = vmatprep.mubr.msk.f32.mxu0 %vm3883_vm0, %v3882_v0  ;;  %3345 = vmatpush3.msra.mxu0 %v4157_v50 }
0x1344   :  { %3346 = vmatprep.subr.mxu0 %v3882_v0 }
0x1345   :  { %3347 = vmatpush3.msra.mxu0 %v4160_v52 }
0x1346   :  { %3348 = vmatprep.subr.mxu0 %v3882_v0 }
0x1347   :  { %3349 = vmatpush3.msra.mxu0 %v4164_v54 }
0x1348   :  { %3350 = vmatprep.subr.mxu0 %v3882_v0 }
0x1349   :  { %3351 = vmatpush3.msra.mxu0 %v4169_v56 }
0x134a   :  { %3353 = vmatmul.mubr.f32.vlgmr.msra.gmra.mxu0 %v3882_v0  ;;  %3366 = vmatprep.subr.mxu0 %v3882_v0 }
0x134b   :  { %3374 = vmatprep.mubr.msk.f32.mxu0 %vm3883_vm0, %v3882_v0  ;;  %3367 = vmatpush3.msra.mxu0 %v4157_v50 }
0x134c   :  { %3368 = vmatprep.subr.mxu0 %v3882_v0 }
0x134d   :  { %3369 = vmatpush3.msra.mxu0 %v4160_v52 }
0x134e   :  { %3370 = vmatprep.subr.mxu0 %v3882_v0 }
0x134f   :  { %3371 = vmatpush3.msra.mxu0 %v4164_v54 }
0x1350   :  { %3372 = vmatprep.subr.mxu0 %v3882_v0 }
0x1351   :  { %3373 = vmatpush3.msra.mxu0 %v4169_v56 }
0x1352   :  { %3388 = vmatprep.subr.mxu0 %v3882_v0 }
0x1402   :  { %v1021_v35 = vpop.f32.mrf.mxu0 }
0x1403   :  { %v1026_v36 = vrot.slane %v1021_v35, 1 }
0x1404   :  { %v3332_v37 = vpop.f32.mrf.mxu0 }
0x1405   :  { %v1028_v38 = vadd.f32 %v1026_v36, %v4044_v10  ;;  %v1073_v10 = vld [vmem:[#allocation6 + $0x18] sm:$0xff] }
0x1406   :  { %3334 = vmatpush3.msra.mxu1 %v1073_v10 }
0x1407   :  { %3610 = vtanh.f32 %v1028_v38  ;;  %v3063_v40 = vmul.f32 -1.442695, %v1028_v38  ;;  %3335 = vmatprep.subr.mxu1 %v3882_v0 }
0x1408   :  { %3336 = vmatpush3.msra.mxu1 %v1072_v51 }
0x1409   :  { %3612 = vpow2.f32 %v3063_v40  ;;  %3337 = vmatprep.subr.mxu1 %v3882_v0 }
0x140a   :  { %3338 = vmatpush3.msra.mxu1 %v1071_v53  ;;  %v1226_v60 = vpop.f32.mrf.mxu0 }
0x140b   :  { %3339 = vmatprep.subr.mxu1 %v3882_v0 }
0x140c   :  { %3340 = vmatpush3.msra.mxu1 %v1070_v55  ;;  %v3354_v6 = vpop.f32.mrf.mxu0 }
0x140d   :  { %3355 = vmatprep.subr.mxu1 %v3882_v0 }
0x1414   :  { %v3611_v39 = vpop.eup %3610 }
0x1415   :  { %1041 = vrot.lane.b32.xlu0 %v3611_v39, %s3884_s19 }
0x1416   :  { %v3613_v41 = vpop.eup %3612 }
0x1417   :  { %v1032_v42 = vadd.f32 1.0, %v3613_v41 }
0x1419   :  { %3614 = vrcp.f32 %v1032_v42 }
0x1426   :  { %v3615_v43 = vpop.eup %3614 }
0x1427   :  { %v1039_v47 = vmul.f32 %v3615_v43, %v1037_v46 }
0x1487   :  { %v1042_v44 = vpop.permute.xlu0 %1041 }
0x1488   :  { %v1044_v45 = vmul.f32 %v3615_v43, %v1042_v44 }
0x148a   :  { %1046 = vrot.lane.b32.xlu1 %v1044_v45, %s3884_s19 }
0x14fc   :  { %v1047_v48 = vpop.permute.xlu1 %1046 }
0x14fd   :  { %v1049_v49 = vadd.f32 %v1047_v48, %v1039_v47 }
0x14ff   :  { %3616 = vtanh.f32 %v1049_v49 }
0x150c   :  { %v3617_v2 = vpop.eup %3616 }
0x150d   :  { %1052 = vrot.lane.b32.xlu0 %v3617_v2, %s3884_s19 }
0x157f   :  { %v1053_v57 = vpop.permute.xlu0 %1052 }
0x1580   :  { %v1055_v58 = vmul.f32 %v3615_v43, %v1053_v57 }
0x1582   :  { %v1069_v4 = vsel %vm1068_vm9, %v4148_v33, %v1055_v58 }
0x1583   :  { %1086 = vrot.lane.b32.xlu1 %v1069_v4, %s3885_s3 }
0x15f5   :  { %v1087_v59 = vpop.permute.xlu1 %1086 }
0x15f6   :  { %3342 = vmatmul.mubr.msk.f32.vlgmr.msra.gmra.mxu1 %vm209_vm2, %v1087_v59 }
0x15f7   :  { %3356 = vmatpush3.msra.mxu1 %v4157_v50  ;;  %3363 = vmatprep.mubr.msk.f32.mxu1 %vm3883_vm0, %v3882_v0 }
0x15f8   :  { %3357 = vmatprep.subr.mxu1 %v3882_v0 }
0x15f9   :  { %3358 = vmatpush3.msra.mxu1 %v4160_v52 }
0x15fa   :  { %3359 = vmatprep.subr.mxu1 %v3882_v0 }
0x15fb   :  { %3360 = vmatpush3.msra.mxu1 %v4164_v54 }
0x15fc   :  { %3361 = vmatprep.subr.mxu1 %v3882_v0 }
0x15fd   :  { %3362 = vmatpush3.msra.mxu1 %v4169_v56 }
0x15fe   :  { %3377 = vmatprep.subr.mxu1 %v3882_v0 }
0x16b6   :  { %v1156_v62 = vpop.f32.mrf.mxu1 }
0x16b7   :  { %v4206_v7 = vadd.f32 %v3064_v61, %v1156_v62 }
0x16b8   :  { %v3343_v63 = vpop.f32.mrf.mxu1 }
0x16b9   :  { %v1230_v1 = vadd.f32 %v1226_v60, %v4206_v7 }
0x16bb   :  { %3618 = vtanh.f32 %v1230_v1  ;;  %v3066_v5 = vmul.f32 -1.442695, %v1230_v1 }
0x16bd   :  { %3620 = vpow2.f32 %v3066_v5 }
0x16c8   :  { %v3619_v3 = vpop.eup %3618 }
0x16c9   :  { %1240 = vrot.lane.b32.xlu0 %v3619_v3, %s3884_s19 }
0x16ca   :  { %v3621_v8 = vpop.eup %3620 }
0x16cb   :  { %v1234_v9 = vadd.f32 1.0, %v3621_v8 }
0x16cd   :  { %3622 = vrcp.f32 %v1234_v9 }
0x16da   :  { %v3623_v11 = vpop.eup %3622 }
0x16db   :  { %v1238_v14 = vmul.f32 0.0, %v3623_v11 }
0x173b   :  { %v1241_v12 = vpop.permute.xlu0 %1240 }
0x173c   :  { %v1243_v13 = vmul.f32 %v3623_v11, %v1241_v12 }
0x173e   :  { %1245 = vrot.lane.b32.xlu1 %v1243_v13, %s3884_s19 }
0x17b0   :  { %v1246_v15 = vpop.permute.xlu1 %1245 }
0x17b1   :  { %v1248_v16 = vadd.f32 %v1246_v15, %v1238_v14 }
0x17b3   :  { %3624 = vtanh.f32 %v1248_v16  ;;  %v1342_v32 = vrot.slane %v1248_v16, 7 }
0x17c0   :  { %v3625_v17 = vpop.eup %3624 }
0x17c1   :  { %1251 = vrot.lane.b32.xlu0 %v3625_v17, %s3884_s19 }
0x1833   :  { %v1252_v18 = vpop.permute.xlu0 %1251 }
0x1834   :  { %v4212_v19 = vmul.f32 %v3623_v11, %v1252_v18 }
0x1836   :  { %1256 = vrot.lane.b32.xlu1 %v4212_v19, %s3885_s3 }
0x18a8   :  { %v1257_v20 = vpop.permute.xlu1 %1256 }
0x18a9   :  { %3364 = vmatmul.mubr.msk.f32.vlgmr.msra.gmra.mxu1 %vm209_vm2, %v1257_v20 }
0x18aa   :  { %3378 = vmatpush3.msra.mxu1 %v4157_v50  ;;  %3385 = vmatprep.mubr.msk.f32.mxu1 %vm3883_vm0, %v3882_v0 }
0x18ab   :  { %3379 = vmatprep.subr.mxu1 %v3882_v0 }
0x18ac   :  { %3380 = vmatpush3.msra.mxu1 %v4160_v52 }
0x18ad   :  { %3381 = vmatprep.subr.mxu1 %v3882_v0 }
0x18ae   :  { %3382 = vmatpush3.msra.mxu1 %v4164_v54 }
0x18af   :  { %3383 = vmatprep.subr.mxu1 %v3882_v0 }
0x18b0   :  { %3384 = vmatpush3.msra.mxu1 %v4169_v56 }
0x18b1   :  { %3399 = vmatprep.subr.mxu1 %v3882_v0 }
0x1969   :  { %v1326_v21 = vpop.f32.mrf.mxu1 }
0x196a   :  { %v1331_v22 = vrot.slane %v1326_v21, 7 }
0x196b   :  { %v3365_v23 = vpop.f32.mrf.mxu1 }
0x196c   :  { %v1333_v24 = vadd.f32 %v1331_v22, %v4206_v7 }
0x196e   :  { %3626 = vtanh.f32 %v1333_v24  ;;  %v3068_v26 = vmul.f32 -1.442695, %v1333_v24 }
0x1970   :  { %3628 = vpow2.f32 %v3068_v26 }
0x197b   :  { %v3627_v25 = vpop.eup %3626 }
0x197c   :  { %1346 = vrot.lane.b32.xlu0 %v3627_v25, %s3884_s19 }
0x197d   :  { %v3629_v27 = vpop.eup %3628 }
0x197e   :  { %v1337_v28 = vadd.f32 1.0, %v3629_v27 }
0x1980   :  { %3630 = vrcp.f32 %v1337_v28 }
0x198d   :  { %v3631_v29 = vpop.eup %3630 }
0x198e   :  { %v1344_v33 = vmul.f32 %v3631_v29, %v1342_v32 }
0x19ee   :  { %v1347_v30 = vpop.permute.xlu0 %1346 }
0x19ef   :  { %v1349_v31 = vmul.f32 %v3631_v29, %v1347_v30 }
0x19f1   :  { %1351 = vrot.lane.b32.xlu1 %v1349_v31, %s3884_s19 }
0x1a63   :  { %v1352_v34 = vpop.permute.xlu1 %1351 }
0x1a64   :  { %v1354_v35 = vadd.f32 %v1352_v34, %v1344_v33 }
0x1a66   :  { %3632 = vtanh.f32 %v1354_v35  ;;  %v1449_v53 = vrot.slane %v1354_v35, 7 }
0x1a73   :  { %v3633_v36 = vpop.eup %3632 }
0x1a74   :  { %1357 = vrot.lane.b32.xlu0 %v3633_v36, %s3884_s19 }
0x1ae6   :  { %v1358_v37 = vpop.permute.xlu0 %1357 }
0x1ae7   :  { %v1360_v38 = vmul.f32 %v3631_v29, %v1358_v37 }
0x1ae9   :  { %v1362_v39 = vrot.slane %v1360_v38, 1  ;;  %v2003_v60 = vsel %vm1056_vm3, %v4212_v19, %v1360_v38 }
0x1aeb   :  { %1363 = vrot.lane.b32.xlu1 %v1362_v39, %s3885_s3 }
0x1b5d   :  { %v1364_v40 = vpop.permute.xlu1 %1363 }
0x1b5e   :  { %3375 = vmatmul.mubr.msk.f32.vlgmr.msra.gmra.mxu0 %vm209_vm2, %v1364_v40 }
0x1b5f   :  { %3389 = vmatpush3.msra.mxu0 %v4157_v50  ;;  %3396 = vmatprep.mubr.msk.f32.mxu0 %vm3883_vm0, %v3882_v0 }
0x1b60   :  { %3390 = vmatprep.subr.mxu0 %v3882_v0 }
0x1b61   :  { %3391 = vmatpush3.msra.mxu0 %v4160_v52 }
0x1b62   :  { %3392 = vmatprep.subr.mxu0 %v3882_v0 }
0x1b63   :  { %3393 = vmatpush3.msra.mxu0 %v4164_v54 }
0x1b64   :  { %3394 = vmatprep.subr.mxu0 %v3882_v0 }
0x1b65   :  { %3395 = vmatpush3.msra.mxu0 %v4169_v56 }
0x1b66   :  { %3410 = vmatprep.subr.mxu0 %v3882_v0 }
0x1c1e   :  { %v1433_v41 = vpop.f32.mrf.mxu0 }
0x1c1f   :  { %v1438_v42 = vrot.slane %v1433_v41, 6 }
0x1c20   :  { %v3376_v43 = vpop.f32.mrf.mxu0 }
0x1c21   :  { %v1440_v44 = vadd.f32 %v1438_v42, %v4206_v7 }
0x1c23   :  { %3634 = vtanh.f32 %v1440_v44  ;;  %v3070_v46 = vmul.f32 -1.442695, %v1440_v44 }
0x1c25   :  { %3636 = vpow2.f32 %v3070_v46 }
0x1c30   :  { %v3635_v45 = vpop.eup %3634 }
0x1c31   :  { %1453 = vrot.lane.b32.xlu0 %v3635_v45, %s3884_s19 }
0x1c32   :  { %v3637_v47 = vpop.eup %3636 }
0x1c33   :  { %v1444_v48 = vadd.f32 1.0, %v3637_v47 }
0x1c35   :  { %3638 = vrcp.f32 %v1444_v48 }
0x1c42   :  { %v3639_v49 = vpop.eup %3638 }
0x1c43   :  { %v1451_v55 = vmul.f32 %v3639_v49, %v1449_v53 }
0x1ca3   :  { %v1454_v10 = vpop.permute.xlu0 %1453 }
0x1ca4   :  { %v1456_v51 = vmul.f32 %v3639_v49, %v1454_v10 }
0x1ca6   :  { %1458 = vrot.lane.b32.xlu1 %v1456_v51, %s3884_s19 }
0x1d18   :  { %v1459_v2 = vpop.permute.xlu1 %1458 }
0x1d19   :  { %v1461_v57 = vadd.f32 %v1459_v2, %v1451_v55 }
0x1d1b   :  { %3640 = vtanh.f32 %v1461_v57  ;;  %v1556_v16 = vrot.slane %v1461_v57, 7 }
0x1d28   :  { %v3641_v58 = vpop.eup %3640 }
0x1d29   :  { %1464 = vrot.lane.b32.xlu0 %v3641_v58, %s3884_s19 }
0x1d9b   :  { %v1465_v4 = vpop.permute.xlu0 %1464 }
0x1d9c   :  { %v1467_v59 = vmul.f32 %v3639_v49, %v1465_v4 }
0x1d9e   :  { %v1469_v6 = vrot.slane %v1467_v59, 2  ;;  %v2004_v61 = vsel %vm1058_vm4, %v2003_v60, %v1467_v59 }
0x1da0   :  { %1470 = vrot.lane.b32.xlu1 %v1469_v6, %s3885_s3 }
0x1e12   :  { %v1471_v62 = vpop.permute.xlu1 %1470 }
0x1e13   :  { %3386 = vmatmul.mubr.msk.f32.vlgmr.msra.gmra.mxu1 %vm209_vm2, %v1471_v62 }
0x1e14   :  { %3400 = vmatpush3.msra.mxu1 %v4157_v50  ;;  %3407 = vmatprep.mubr.msk.f32.mxu1 %vm3883_vm0, %v3882_v0 }
0x1e15   :  { %3401 = vmatprep.subr.mxu1 %v3882_v0 }
0x1e16   :  { %3402 = vmatpush3.msra.mxu1 %v4160_v52 }
0x1e17   :  { %3403 = vmatprep.subr.mxu1 %v3882_v0 }
0x1e18   :  { %3404 = vmatpush3.msra.mxu1 %v4164_v54 }
0x1e19   :  { %3405 = vmatprep.subr.mxu1 %v3882_v0 }
0x1e1a   :  { %3406 = vmatpush3.msra.mxu1 %v4169_v56 }
0x1e1b   :  { %3421 = vmatprep.subr.mxu1 %v3882_v0 }
0x1ed3   :  { %v1540_v63 = vpop.f32.mrf.mxu1 }
0x1ed4   :  { %v1545_v1 = vrot.slane %v1540_v63, 5 }
0x1ed5   :  { %v3387_v3 = vpop.f32.mrf.mxu1 }
0x1ed6   :  { %v1547_v5 = vadd.f32 %v1545_v1, %v4206_v7 }
0x1ed8   :  { %3642 = vtanh.f32 %v1547_v5  ;;  %v3072_v9 = vmul.f32 -1.442695, %v1547_v5 }
0x1eda   :  { %3644 = vpow2.f32 %v3072_v9 }
0x1ee5   :  { %v3643_v8 = vpop.eup %3642 }
0x1ee6   :  { %1560 = vrot.lane.b32.xlu0 %v3643_v8, %s3884_s19 }
0x1ee7   :  { %v3645_v11 = vpop.eup %3644 }
0x1ee8   :  { %v1551_v12 = vadd.f32 1.0, %v3645_v11 }
0x1eea   :  { %3646 = vrcp.f32 %v1551_v12 }
0x1ef7   :  { %v3647_v13 = vpop.eup %3646 }
0x1ef8   :  { %v1558_v17 = vmul.f32 %v3647_v13, %v1556_v16 }
0x1f58   :  { %v1561_v14 = vpop.permute.xlu0 %1560 }
0x1f59   :  { %v1563_v15 = vmul.f32 %v3647_v13, %v1561_v14 }
0x1f5b   :  { %1565 = vrot.lane.b32.xlu1 %v1563_v15, %s3884_s19 }
0x1fcd   :  { %v1566_v18 = vpop.permute.xlu1 %1565 }
0x1fce   :  { %v1568_v19 = vadd.f32 %v1566_v18, %v1558_v17 }
0x1fd0   :  { %3648 = vtanh.f32 %v1568_v19  ;;  %v1663_v37 = vrot.slane %v1568_v19, 7 }
0x1fdd   :  { %v3649_v20 = vpop.eup %3648 }
0x1fde   :  { %1571 = vrot.lane.b32.xlu0 %v3649_v20, %s3884_s19 }
0x2050   :  { %v1572_v21 = vpop.permute.xlu0 %1571 }
0x2051   :  { %v1574_v22 = vmul.f32 %v3647_v13, %v1572_v21 }
0x2053   :  { %v1576_v23 = vrot.slane %v1574_v22, 3  ;;  %v2005_v24 = vsel %vm1060_vm5, %v2004_v61, %v1574_v22 }
0x2055   :  { %1577 = vrot.lane.b32.xlu1 %v1576_v23, %s3885_s3 }
0x20c7   :  { %v1578_v25 = vpop.permute.xlu1 %1577 }
0x20c8   :  { %3397 = vmatmul.mubr.msk.f32.vlgmr.msra.gmra.mxu0 %vm209_vm2, %v1578_v25 }
0x20c9   :  { %3411 = vmatpush3.msra.mxu0 %v4157_v50  ;;  %3418 = vmatprep.mubr.msk.f32.mxu0 %vm3883_vm0, %v3882_v0 }
0x20ca   :  { %3412 = vmatprep.subr.mxu0 %v3882_v0 }
0x20cb   :  { %3413 = vmatpush3.msra.mxu0 %v4160_v52 }
0x20cc   :  { %3414 = vmatprep.subr.mxu0 %v3882_v0 }
0x20cd   :  { %3415 = vmatpush3.msra.mxu0 %v4164_v54 }
0x20ce   :  { %3416 = vmatprep.subr.mxu0 %v3882_v0 }
0x20cf   :  { %3417 = vmatpush3.msra.mxu0 %v4169_v56 }
0x20d0   :  { %3432 = vmatprep.subr.mxu0 %v3882_v0 }
0x2188   :  { %v1647_v26 = vpop.f32.mrf.mxu0 }
0x2189   :  { %v1652_v27 = vrot.slane %v1647_v26, 4 }
0x218a   :  { %v3398_v28 = vpop.f32.mrf.mxu0 }
0x218b   :  { %v1654_v29 = vadd.f32 %v1652_v27, %v4206_v7 }
0x218d   :  { %3650 = vtanh.f32 %v1654_v29  ;;  %v3074_v31 = vmul.f32 -1.442695, %v1654_v29 }
0x218f   :  { %3652 = vpow2.f32 %v3074_v31 }
0x219a   :  { %v3651_v30 = vpop.eup %3650 }
0x219b   :  { %1667 = vrot.lane.b32.xlu0 %v3651_v30, %s3884_s19 }
0x219c   :  { %v3653_v32 = vpop.eup %3652 }
0x219d   :  { %v1658_v33 = vadd.f32 1.0, %v3653_v32 }
0x219f   :  { %3654 = vrcp.f32 %v1658_v33 }
0x21ac   :  { %v3655_v34 = vpop.eup %3654 }
0x21ad   :  { %v1665_v38 = vmul.f32 %v3655_v34, %v1663_v37 }
0x220d   :  { %v1668_v35 = vpop.permute.xlu0 %1667 }
0x220e   :  { %v1670_v36 = vmul.f32 %v3655_v34, %v1668_v35 }
0x2210   :  { %1672 = vrot.lane.b32.xlu1 %v1670_v36, %s3884_s19 }
0x2282   :  { %v1673_v39 = vpop.permute.xlu1 %1672 }
0x2283   :  { %v1675_v40 = vadd.f32 %v1673_v39, %v1665_v38 }
0x2285   :  { %3656 = vtanh.f32 %v1675_v40 }
0x2292   :  { %v3657_v41 = vpop.eup %3656 }
0x2293   :  { %1678 = vrot.lane.b32.xlu0 %v3657_v41, %s3884_s19 }
0x2305   :  { %v1679_v42 = vpop.permute.xlu0 %1678 }
0x2306   :  { %v1681_v43 = vmul.f32 %v3655_v34, %v1679_v42  ;;  %v4319_v42 = vld [vmem:[#allocation10 + $0x18] sm:$0xff] }
0x2308   :  { %v1683_v44 = vrot.slane %v1681_v43, 4  ;;  %v2006_v45 = vsel %vm1062_vm6, %v2005_v24, %v1681_v43  ;;  %v2012_v43 = vld [vmem:[#allocation9 + $0x10] sm:$0xff] }
0x230a   :  { %1684 = vrot.lane.b32.xlu1 %v1683_v44, %s3885_s3  ;;  %v4322_v44 = vld [vmem:[#allocation10 + $0x10] sm:$0xff] }
0x237c   :  { %v1685_v46 = vpop.permute.xlu1 %1684 }
0x237d   :  { %3408 = vmatmul.mubr.msk.f32.vlgmr.msra.gmra.mxu1 %vm209_vm2, %v1685_v46  ;;  %v4326_v46 = vld [vmem:[#allocation10 + $0x8] sm:$0xff] }
0x237e   :  { %3422 = vmatpush3.msra.mxu1 %v4157_v50  ;;  %3429 = vmatprep.mubr.msk.f32.mxu1 %vm3883_vm0, %v3882_v0 }
0x237f   :  { %3423 = vmatprep.subr.mxu1 %v3882_v0 }
0x2380   :  { %3424 = vmatpush3.msra.mxu1 %v4160_v52 }
0x2381   :  { %3425 = vmatprep.subr.mxu1 %v3882_v0 }
0x2382   :  { %3426 = vmatpush3.msra.mxu1 %v4164_v54 }
0x2383   :  { %3427 = vmatprep.subr.mxu1 %v3882_v0 }
0x2384   :  { %3428 = vmatpush3.msra.mxu1 %v4169_v56  ;;  %v1770_v56 = vrot.slane %v1675_v40, 7 }
0x2385   :  { %3443 = vmatprep.subr.mxu1 %v3882_v0 }
0x243d   :  { %v1754_v47 = vpop.f32.mrf.mxu1 }
0x243e   :  { %v1759_v48 = vrot.slane %v1754_v47, 3  ;;  %v2010_v47 = vld [vmem:[#allocation9] sm:$0xff] }
0x243f   :  { %v3409_v50 = vpop.f32.mrf.mxu1 }
0x2440   :  { %v1761_v49 = vadd.f32 %v1759_v48, %v4206_v7  ;;  %v4331_v48 = vld [vmem:[#allocation10] sm:$0xff] }
0x2442   :  { %3658 = vtanh.f32 %v1761_v49  ;;  %v3076_v52 = vmul.f32 -1.442695, %v1761_v49 }
0x2444   :  { %3660 = vpow2.f32 %v3076_v52 }
0x244f   :  { %v3659_v10 = vpop.eup %3658 }
0x2450   :  { %1774 = vrot.lane.b32.xlu0 %v3659_v10, %s3884_s19 }
0x2451   :  { %v3661_v51 = vpop.eup %3660 }
0x2452   :  { %v1765_v53 = vadd.f32 1.0, %v3661_v51 }
0x2454   :  { %3662 = vrcp.f32 %v1765_v53 }
0x2461   :  { %v3663_v54 = vpop.eup %3662 }
0x2462   :  { %v1772_v57 = vmul.f32 %v3663_v54, %v1770_v56 }
0x24c2   :  { %v1775_v55 = vpop.permute.xlu0 %1774 }
0x24c3   :  { %v1777_v2 = vmul.f32 %v3663_v54, %v1775_v55  ;;  %v3081_v55 = vld [vmem:[%s4510_s9] ss:$0 sm:$0xff] }
0x24c5   :  { %1779 = vrot.lane.b32.xlu1 %v1777_v2, %s3884_s19 }
0x2537   :  { %v1780_v58 = vpop.permute.xlu1 %1779 }
0x2538   :  { %v1782_v4 = vadd.f32 %v1780_v58, %v1772_v57 }
0x253a   :  { %3664 = vtanh.f32 %v1782_v4  ;;  %v1877_v17 = vrot.slane %v1782_v4, 7 }
0x2547   :  { %v3665_v59 = vpop.eup %3664 }
0x2548   :  { %1785 = vrot.lane.b32.xlu0 %v3665_v59, %s3884_s19 }
0x25ba   :  { %v1786_v60 = vpop.permute.xlu0 %1785 }
0x25bb   :  { %v1788_v6 = vmul.f32 %v3663_v54, %v1786_v60 }
0x25bd   :  { %v1790_v61 = vrot.slane %v1788_v6, 5  ;;  %v2007_v62 = vsel %vm1064_vm7, %v2006_v45, %v1788_v6  ;;  %v2011_v45 = vld [vmem:[#allocation9 + $0x8] sm:$0xff] }
0x25bf   :  { %1791 = vrot.lane.b32.xlu1 %v1790_v61, %s3885_s3 }
0x2631   :  { %v1792_v63 = vpop.permute.xlu1 %1791 }
0x2632   :  { %3419 = vmatmul.mubr.msk.f32.vlgmr.msra.gmra.mxu0 %vm209_vm2, %v1792_v63 }
0x2633   :  { %3440 = vmatprep.mubr.msk.f32.mxu0 %vm3883_vm0, %v3882_v0 }
0x26f2   :  { %v1861_v1 = vpop.f32.mrf.mxu0 }
0x26f3   :  { %v1866_v3 = vrot.slane %v1861_v1, 2 }
0x26f4   :  { %v3420_v5 = vpop.f32.mrf.mxu0 }
0x26f5   :  { %v1868_v8 = vadd.f32 %v1866_v3, %v4206_v7 }
0x26f7   :  { %3666 = vtanh.f32 %v1868_v8  ;;  %v3078_v11 = vmul.f32 -1.442695, %v1868_v8 }
0x26f9   :  { %3668 = vpow2.f32 %v3078_v11 }
0x2704   :  { %v3667_v9 = vpop.eup %3666 }
0x2705   :  { %1881 = vrot.lane.b32.xlu0 %v3667_v9, %s3884_s19 }
0x2706   :  { %v3669_v12 = vpop.eup %3668 }
0x2707   :  { %v1872_v13 = vadd.f32 1.0, %v3669_v12 }
0x2709   :  { %3670 = vrcp.f32 %v1872_v13 }
0x2716   :  { %v3671_v14 = vpop.eup %3670 }
0x2717   :  { %v1879_v18 = vmul.f32 %v3671_v14, %v1877_v17 }
0x2777   :  { %v1882_v15 = vpop.permute.xlu0 %1881 }
0x2778   :  { %v1884_v16 = vmul.f32 %v3671_v14, %v1882_v15 }
0x277a   :  { %1886 = vrot.lane.b32.xlu1 %v1884_v16, %s3884_s19 }
0x27ec   :  { %v1887_v19 = vpop.permute.xlu1 %1886 }
0x27ed   :  { %v1889_v20 = vadd.f32 %v1887_v19, %v1879_v18 }
0x27ef   :  { %3672 = vtanh.f32 %v1889_v20  ;;  %v1984_v38 = vrot.slane %v1889_v20, 7 }
0x27fc   :  { %v3673_v21 = vpop.eup %3672 }
0x27fd   :  { %1892 = vrot.lane.b32.xlu0 %v3673_v21, %s3884_s19 }
0x286f   :  { %v1893_v22 = vpop.permute.xlu0 %1892 }
0x2870   :  { %v1895_v23 = vmul.f32 %v3671_v14, %v1893_v22 }
0x2872   :  { %v1897_v24 = vrot.slane %v1895_v23, 6  ;;  %v4310_v25 = vsel %vm1066_vm8, %v2007_v62, %v1895_v23 }
0x2874   :  { %1898 = vrot.lane.b32.xlu1 %v1897_v24, %s3885_s3 }
0x28e6   :  { %v1899_v26 = vpop.permute.xlu1 %1898 }
0x28e7   :  { %3430 = vmatmul.mubr.msk.f32.vlgmr.msra.gmra.mxu1 %vm209_vm2, %v1899_v26 }
0x28e8   :  { %3451 = vmatprep.mubr.msk.f32.mxu1 %vm3883_vm0, %v3882_v0  ;;  %3444 = vmatpush3.msra.mxu1 %v4319_v42 }
0x28e9   :  { %3445 = vmatprep.subr.mxu1 %v3882_v0 }
0x28ea   :  { %3446 = vmatpush3.msra.mxu1 %v4322_v44 }
0x28eb   :  { %3447 = vmatprep.subr.mxu1 %v3882_v0 }
0x28ec   :  { %3448 = vmatpush3.msra.mxu1 %v4326_v46 }
0x28ed   :  { %3449 = vmatprep.subr.mxu1 %v3882_v0 }
0x28ee   :  { %3450 = vmatpush3.msra.mxu1 %v4331_v48 }
0x28ef   :  { %3452 = vmatmul.mubr.f32.vlgmr.msra.gmra.mxu1 %v3882_v0  ;;  %3465 = vmatprep.subr.mxu1 %v3882_v0 }
0x28f0   :  { %3473 = vmatprep.mubr.msk.f32.mxu1 %vm3883_vm0, %v3882_v0  ;;  %3466 = vmatpush3.msra.mxu1 %v4319_v42 }
0x28f1   :  { %3467 = vmatprep.subr.mxu1 %v3882_v0 }
0x28f2   :  { %3468 = vmatpush3.msra.mxu1 %v4322_v44 }
0x28f3   :  { %3469 = vmatprep.subr.mxu1 %v3882_v0 }
0x28f4   :  { %3470 = vmatpush3.msra.mxu1 %v4326_v46 }
0x28f5   :  { %3471 = vmatprep.subr.mxu1 %v3882_v0 }
0x28f6   :  { %3472 = vmatpush3.msra.mxu1 %v4331_v48 }
0x28f7   :  { %3487 = vmatprep.subr.mxu1 %v3882_v0 }
0x29a7   :  { %v1968_v27 = vpop.f32.mrf.mxu1 }
0x29a8   :  { %v1973_v28 = vrot.slane %v1968_v27, 1 }
0x29a9   :  { %v3431_v29 = vpop.f32.mrf.mxu1 }
0x29aa   :  { %v1975_v30 = vadd.f32 %v1973_v28, %v4206_v7  ;;  %v2013_v7 = vld [vmem:[#allocation9 + $0x18] sm:$0xff] }
0x29ab   :  { %3433 = vmatpush3.msra.mxu0 %v2013_v7 }
0x29ac   :  { %3674 = vtanh.f32 %v1975_v30  ;;  %v3080_v32 = vmul.f32 -1.442695, %v1975_v30  ;;  %3434 = vmatprep.subr.mxu0 %v3882_v0 }
0x29ad   :  { %3435 = vmatpush3.msra.mxu0 %v2012_v43 }
0x29ae   :  { %3676 = vpow2.f32 %v3080_v32  ;;  %3436 = vmatprep.subr.mxu0 %v3882_v0 }
0x29af   :  { %3437 = vmatpush3.msra.mxu0 %v2011_v45  ;;  %v2166_v53 = vpop.f32.mrf.mxu1 }
0x29b0   :  { %3438 = vmatprep.subr.mxu0 %v3882_v0 }
0x29b1   :  { %3439 = vmatpush3.msra.mxu0 %v2010_v47  ;;  %v3453_v54 = vpop.f32.mrf.mxu1 }
0x29b2   :  { %3454 = vmatprep.subr.mxu0 %v3882_v0 }
0x29b9   :  { %v3675_v31 = vpop.eup %3674 }
0x29ba   :  { %1988 = vrot.lane.b32.xlu0 %v3675_v31, %s3884_s19 }
0x29bb   :  { %v3677_v33 = vpop.eup %3676 }
0x29bc   :  { %v1979_v34 = vadd.f32 1.0, %v3677_v33 }
0x29be   :  { %3678 = vrcp.f32 %v1979_v34 }
0x29cb   :  { %v3679_v35 = vpop.eup %3678 }
0x29cc   :  { %v1986_v39 = vmul.f32 %v3679_v35, %v1984_v38 }
0x2a2c   :  { %v1989_v36 = vpop.permute.xlu0 %1988 }
0x2a2d   :  { %v1991_v37 = vmul.f32 %v3679_v35, %v1989_v36 }
0x2a2f   :  { %1993 = vrot.lane.b32.xlu1 %v1991_v37, %s3884_s19 }
0x2aa1   :  { %v1994_v40 = vpop.permute.xlu1 %1993 }
0x2aa2   :  { %v1996_v41 = vadd.f32 %v1994_v40, %v1986_v39 }
0x2aa4   :  { %3680 = vtanh.f32 %v1996_v41 }
0x2ab1   :  { %v3681_v50 = vpop.eup %3680 }
0x2ab2   :  { %1999 = vrot.lane.b32.xlu0 %v3681_v50, %s3884_s19 }
0x2b24   :  { %v2000_v49 = vpop.permute.xlu0 %1999 }
0x2b25   :  { %v2002_v10 = vmul.f32 %v3679_v35, %v2000_v49 }
0x2b27   :  { %v2009_v52 = vsel %vm1068_vm9, %v4310_v25, %v2002_v10 }
0x2b28   :  { %2026 = vrot.lane.b32.xlu1 %v2009_v52, %s3885_s3 }
0x2b9a   :  { %v2027_v51 = vpop.permute.xlu1 %2026 }
0x2b9b   :  { %3441 = vmatmul.mubr.msk.f32.vlgmr.msra.gmra.mxu0 %vm209_vm2, %v2027_v51 }
0x2b9c   :  { %3455 = vmatpush3.msra.mxu0 %v4319_v42  ;;  %3462 = vmatprep.mubr.msk.f32.mxu0 %vm3883_vm0, %v3882_v0 }
0x2b9d   :  { %3456 = vmatprep.subr.mxu0 %v3882_v0 }
0x2b9e   :  { %3457 = vmatpush3.msra.mxu0 %v4322_v44 }
0x2b9f   :  { %3458 = vmatprep.subr.mxu0 %v3882_v0 }
0x2ba0   :  { %3459 = vmatpush3.msra.mxu0 %v4326_v46 }
0x2ba1   :  { %3460 = vmatprep.subr.mxu0 %v3882_v0 }
0x2ba2   :  { %3461 = vmatpush3.msra.mxu0 %v4331_v48 }
0x2ba3   :  { %3476 = vmatprep.subr.mxu0 %v3882_v0 }
0x2c5b   :  { %v2096_v2 = vpop.f32.mrf.mxu0 }
0x2c5c   :  { %v4368_v56 = vadd.f32 %v3081_v55, %v2096_v2 }
0x2c5d   :  { %v3442_v57 = vpop.f32.mrf.mxu0 }
0x2c5e   :  { %v2170_v58 = vadd.f32 %v2166_v53, %v4368_v56 }
0x2c60   :  { %3682 = vtanh.f32 %v2170_v58  ;;  %v3083_v59 = vmul.f32 -1.442695, %v2170_v58 }
0x2c62   :  { %3684 = vpow2.f32 %v3083_v59 }
0x2c6d   :  { %v3683_v4 = vpop.eup %3682 }
0x2c6e   :  { %2180 = vrot.lane.b32.xlu0 %v3683_v4, %s3884_s19 }
0x2c6f   :  { %v3685_v60 = vpop.eup %3684 }
0x2c70   :  { %v2174_v6 = vadd.f32 1.0, %v3685_v60 }
0x2c72   :  { %3686 = vrcp.f32 %v2174_v6 }
0x2c7f   :  { %v3687_v61 = vpop.eup %3686 }
0x2c80   :  { %v2178_v1 = vmul.f32 0.0, %v3687_v61 }
0x2ce0   :  { %v2181_v62 = vpop.permute.xlu0 %2180 }
0x2ce1   :  { %v2183_v63 = vmul.f32 %v3687_v61, %v2181_v62 }
0x2ce3   :  { %2185 = vrot.lane.b32.xlu1 %v2183_v63, %s3884_s19 }
0x2d55   :  { %v2186_v3 = vpop.permute.xlu1 %2185 }
0x2d56   :  { %v2188_v5 = vadd.f32 %v2186_v3, %v2178_v1 }
0x2d58   :  { %3688 = vtanh.f32 %v2188_v5  ;;  %v2282_v24 = vrot.slane %v2188_v5, 7 }
0x2d65   :  { %v3689_v8 = vpop.eup %3688 }
0x2d66   :  { %2191 = vrot.lane.b32.xlu0 %v3689_v8, %s3884_s19 }
0x2dd8   :  { %v2192_v9 = vpop.permute.xlu0 %2191 }
0x2dd9   :  { %v4374_v11 = vmul.f32 %v3687_v61, %v2192_v9 }
0x2ddb   :  { %2196 = vrot.lane.b32.xlu1 %v4374_v11, %s3885_s3 }
0x2e4d   :  { %v2197_v12 = vpop.permute.xlu1 %2196 }
0x2e4e   :  { %3463 = vmatmul.mubr.msk.f32.vlgmr.msra.gmra.mxu0 %vm209_vm2, %v2197_v12 }
0x2e4f   :  { %3477 = vmatpush3.msra.mxu0 %v4319_v42  ;;  %3484 = vmatprep.mubr.msk.f32.mxu0 %vm3883_vm0, %v3882_v0 }
0x2e50   :  { %3478 = vmatprep.subr.mxu0 %v3882_v0 }
0x2e51   :  { %3479 = vmatpush3.msra.mxu0 %v4322_v44 }
0x2e52   :  { %3480 = vmatprep.subr.mxu0 %v3882_v0 }
0x2e53   :  { %3481 = vmatpush3.msra.mxu0 %v4326_v46 }
0x2e54   :  { %3482 = vmatprep.subr.mxu0 %v3882_v0 }
0x2e55   :  { %3483 = vmatpush3.msra.mxu0 %v4331_v48 }
0x2e56   :  { %3498 = vmatprep.subr.mxu0 %v3882_v0 }
0x2f0e   :  { %v2266_v13 = vpop.f32.mrf.mxu0 }
0x2f0f   :  { %v2271_v14 = vrot.slane %v2266_v13, 7 }
0x2f10   :  { %v3464_v15 = vpop.f32.mrf.mxu0 }
0x2f11   :  { %v2273_v16 = vadd.f32 %v2271_v14, %v4368_v56 }
0x2f13   :  { %3690 = vtanh.f32 %v2273_v16  ;;  %v3085_v18 = vmul.f32 -1.442695, %v2273_v16 }
0x2f15   :  { %3692 = vpow2.f32 %v3085_v18 }
0x2f20   :  { %v3691_v17 = vpop.eup %3690 }
0x2f21   :  { %2286 = vrot.lane.b32.xlu0 %v3691_v17, %s3884_s19 }
0x2f22   :  { %v3693_v19 = vpop.eup %3692 }
0x2f23   :  { %v2277_v20 = vadd.f32 1.0, %v3693_v19 }
0x2f25   :  { %3694 = vrcp.f32 %v2277_v20 }
0x2f32   :  { %v3695_v21 = vpop.eup %3694 }
0x2f33   :  { %v2284_v25 = vmul.f32 %v3695_v21, %v2282_v24 }
0x2f93   :  { %v2287_v22 = vpop.permute.xlu0 %2286 }
0x2f94   :  { %v2289_v23 = vmul.f32 %v3695_v21, %v2287_v22 }
0x2f96   :  { %2291 = vrot.lane.b32.xlu1 %v2289_v23, %s3884_s19 }
0x3008   :  { %v2292_v26 = vpop.permute.xlu1 %2291 }
0x3009   :  { %v2294_v27 = vadd.f32 %v2292_v26, %v2284_v25 }
0x300b   :  { %3696 = vtanh.f32 %v2294_v27  ;;  %v2389_v45 = vrot.slane %v2294_v27, 7 }
0x3018   :  { %v3697_v28 = vpop.eup %3696 }
0x3019   :  { %2297 = vrot.lane.b32.xlu0 %v3697_v28, %s3884_s19 }
0x308b   :  { %v2298_v29 = vpop.permute.xlu0 %2297 }
0x308c   :  { %v2300_v30 = vmul.f32 %v3695_v21, %v2298_v29 }
0x308e   :  { %v2302_v31 = vrot.slane %v2300_v30, 1  ;;  %v2943_v53 = vsel %vm1056_vm3, %v4374_v11, %v2300_v30 }
0x3090   :  { %2303 = vrot.lane.b32.xlu1 %v2302_v31, %s3885_s3 }
0x3102   :  { %v2304_v32 = vpop.permute.xlu1 %2303 }
0x3103   :  { %3474 = vmatmul.mubr.msk.f32.vlgmr.msra.gmra.mxu1 %vm209_vm2, %v2304_v32 }
0x3104   :  { %3488 = vmatpush3.msra.mxu1 %v4319_v42  ;;  %3495 = vmatprep.mubr.msk.f32.mxu1 %vm3883_vm0, %v3882_v0 }
0x3105   :  { %3489 = vmatprep.subr.mxu1 %v3882_v0 }
0x3106   :  { %3490 = vmatpush3.msra.mxu1 %v4322_v44 }
0x3107   :  { %3491 = vmatprep.subr.mxu1 %v3882_v0 }
0x3108   :  { %3492 = vmatpush3.msra.mxu1 %v4326_v46 }
0x3109   :  { %3493 = vmatprep.subr.mxu1 %v3882_v0 }
0x310a   :  { %3494 = vmatpush3.msra.mxu1 %v4331_v48 }
0x310b   :  { %3509 = vmatprep.subr.mxu1 %v3882_v0 }
0x31c3   :  { %v2373_v33 = vpop.f32.mrf.mxu1 }
0x31c4   :  { %v2378_v34 = vrot.slane %v2373_v33, 6 }
0x31c5   :  { %v3475_v35 = vpop.f32.mrf.mxu1 }
0x31c6   :  { %v2380_v36 = vadd.f32 %v2378_v34, %v4368_v56 }
0x31c8   :  { %3698 = vtanh.f32 %v2380_v36  ;;  %v3087_v38 = vmul.f32 -1.442695, %v2380_v36 }
0x31ca   :  { %3700 = vpow2.f32 %v3087_v38 }
0x31d5   :  { %v3699_v37 = vpop.eup %3698 }
0x31d6   :  { %2393 = vrot.lane.b32.xlu0 %v3699_v37, %s3884_s19 }
0x31d7   :  { %v3701_v39 = vpop.eup %3700 }
0x31d8   :  { %v2384_v40 = vadd.f32 1.0, %v3701_v39 }
0x31da   :  { %3702 = vrcp.f32 %v2384_v40 }
0x31e7   :  { %v3703_v41 = vpop.eup %3702 }
0x31e8   :  { %v2391_v47 = vmul.f32 %v3703_v41, %v2389_v45 }
0x3248   :  { %v2394_v7 = vpop.permute.xlu0 %2393 }
0x3249   :  { %v2396_v43 = vmul.f32 %v3703_v41, %v2394_v7 }
0x324b   :  { %2398 = vrot.lane.b32.xlu1 %v2396_v43, %s3884_s19 }
0x32bd   :  { %v2399_v50 = vpop.permute.xlu1 %2398 }
0x32be   :  { %v2401_v49 = vadd.f32 %v2399_v50, %v2391_v47 }
0x32c0   :  { %3704 = vtanh.f32 %v2401_v49  ;;  %v2496_v5 = vrot.slane %v2401_v49, 7 }
0x32cd   :  { %v3705_v10 = vpop.eup %3704 }
0x32ce   :  { %2404 = vrot.lane.b32.xlu0 %v3705_v10, %s3884_s19 }
0x3340   :  { %v2405_v52 = vpop.permute.xlu0 %2404 }
0x3341   :  { %v2407_v51 = vmul.f32 %v3703_v41, %v2405_v52 }
0x3343   :  { %v2409_v54 = vrot.slane %v2407_v51, 2  ;;  %v2944_v55 = vsel %vm1058_vm4, %v2943_v53, %v2407_v51 }
0x3345   :  { %2410 = vrot.lane.b32.xlu1 %v2409_v54, %s3885_s3 }
0x33b7   :  { %v2411_v2 = vpop.permute.xlu1 %2410 }
0x33b8   :  { %3485 = vmatmul.mubr.msk.f32.vlgmr.msra.gmra.mxu0 %vm209_vm2, %v2411_v2 }
0x33b9   :  { %3499 = vmatpush3.msra.mxu0 %v4319_v42  ;;  %3506 = vmatprep.mubr.msk.f32.mxu0 %vm3883_vm0, %v3882_v0 }
0x33ba   :  { %3500 = vmatprep.subr.mxu0 %v3882_v0 }
0x33bb   :  { %3501 = vmatpush3.msra.mxu0 %v4322_v44 }
0x33bc   :  { %3502 = vmatprep.subr.mxu0 %v3882_v0 }
0x33bd   :  { %3503 = vmatpush3.msra.mxu0 %v4326_v46 }
0x33be   :  { %3504 = vmatprep.subr.mxu0 %v3882_v0 }
0x33bf   :  { %3505 = vmatpush3.msra.mxu0 %v4331_v48 }
0x33c0   :  { %3520 = vmatprep.subr.mxu0 %v3882_v0 }
0x3478   :  { %v2480_v57 = vpop.f32.mrf.mxu0 }
0x3479   :  { %v2485_v58 = vrot.slane %v2480_v57, 5 }
0x347a   :  { %v3486_v4 = vpop.f32.mrf.mxu0 }
0x347b   :  { %v2487_v59 = vadd.f32 %v2485_v58, %v4368_v56 }
0x347d   :  { %3706 = vtanh.f32 %v2487_v59  ;;  %v3089_v6 = vmul.f32 -1.442695, %v2487_v59 }
0x347f   :  { %3708 = vpow2.f32 %v3089_v6 }
0x348a   :  { %v3707_v60 = vpop.eup %3706 }
0x348b   :  { %2500 = vrot.lane.b32.xlu0 %v3707_v60, %s3884_s19 }
0x348c   :  { %v3709_v61 = vpop.eup %3708 }
0x348d   :  { %v2491_v62 = vadd.f32 1.0, %v3709_v61 }
0x348f   :  { %3710 = vrcp.f32 %v2491_v62 }
0x349c   :  { %v3711_v63 = vpop.eup %3710 }
0x349d   :  { %v2498_v8 = vmul.f32 %v3711_v63, %v2496_v5 }
0x34fd   :  { %v2501_v1 = vpop.permute.xlu0 %2500 }
0x34fe   :  { %v2503_v3 = vmul.f32 %v3711_v63, %v2501_v1 }
0x3500   :  { %2505 = vrot.lane.b32.xlu1 %v2503_v3, %s3884_s19 }
0x3572   :  { %v2506_v9 = vpop.permute.xlu1 %2505 }
0x3573   :  { %v2508_v11 = vadd.f32 %v2506_v9, %v2498_v8 }
0x3575   :  { %3712 = vtanh.f32 %v2508_v11  ;;  %v2603_v29 = vrot.slane %v2508_v11, 7 }
0x3582   :  { %v3713_v12 = vpop.eup %3712 }
0x3583   :  { %2511 = vrot.lane.b32.xlu0 %v3713_v12, %s3884_s19 }
0x35f5   :  { %v2512_v13 = vpop.permute.xlu0 %2511 }
0x35f6   :  { %v2514_v14 = vmul.f32 %v3711_v63, %v2512_v13 }
0x35f8   :  { %v2516_v15 = vrot.slane %v2514_v14, 3  ;;  %v2945_v16 = vsel %vm1060_vm5, %v2944_v55, %v2514_v14 }
0x35fa   :  { %2517 = vrot.lane.b32.xlu1 %v2516_v15, %s3885_s3 }
0x366c   :  { %v2518_v17 = vpop.permute.xlu1 %2517 }
0x366d   :  { %3496 = vmatmul.mubr.msk.f32.vlgmr.msra.gmra.mxu1 %vm209_vm2, %v2518_v17 }
0x366e   :  { %3510 = vmatpush3.msra.mxu1 %v4319_v42  ;;  %3517 = vmatprep.mubr.msk.f32.mxu1 %vm3883_vm0, %v3882_v0 }
0x366f   :  { %3511 = vmatprep.subr.mxu1 %v3882_v0 }
0x3670   :  { %3512 = vmatpush3.msra.mxu1 %v4322_v44 }
0x3671   :  { %3513 = vmatprep.subr.mxu1 %v3882_v0 }
0x3672   :  { %3514 = vmatpush3.msra.mxu1 %v4326_v46 }
0x3673   :  { %3515 = vmatprep.subr.mxu1 %v3882_v0 }
0x3674   :  { %3516 = vmatpush3.msra.mxu1 %v4331_v48 }
0x3675   :  { %3531 = vmatprep.subr.mxu1 %v3882_v0 }
0x372d   :  { %v2587_v18 = vpop.f32.mrf.mxu1 }
0x372e   :  { %v2592_v19 = vrot.slane %v2587_v18, 4 }
0x372f   :  { %v3497_v20 = vpop.f32.mrf.mxu1 }
0x3730   :  { %v2594_v21 = vadd.f32 %v2592_v19, %v4368_v56 }
0x3732   :  { %3714 = vtanh.f32 %v2594_v21  ;;  %v3091_v23 = vmul.f32 -1.442695, %v2594_v21 }
0x3734   :  { %3716 = vpow2.f32 %v3091_v23 }
0x373f   :  { %v3715_v22 = vpop.eup %3714 }
0x3740   :  { %2607 = vrot.lane.b32.xlu0 %v3715_v22, %s3884_s19 }
0x3741   :  { %v3717_v24 = vpop.eup %3716 }
0x3742   :  { %v2598_v25 = vadd.f32 1.0, %v3717_v24 }
0x3744   :  { %3718 = vrcp.f32 %v2598_v25 }
0x3751   :  { %v3719_v26 = vpop.eup %3718 }
0x3752   :  { %v2605_v30 = vmul.f32 %v3719_v26, %v2603_v29 }
0x37b2   :  { %v2608_v27 = vpop.permute.xlu0 %2607 }
0x37b3   :  { %v2610_v28 = vmul.f32 %v3719_v26, %v2608_v27 }
0x37b5   :  { %2612 = vrot.lane.b32.xlu1 %v2610_v28, %s3884_s19 }
0x3827   :  { %v2613_v31 = vpop.permute.xlu1 %2612 }
0x3828   :  { %v2615_v32 = vadd.f32 %v2613_v31, %v2605_v30 }
0x382a   :  { %3720 = vtanh.f32 %v2615_v32 }
0x3837   :  { %v3721_v33 = vpop.eup %3720 }
0x3838   :  { %2618 = vrot.lane.b32.xlu0 %v3721_v33, %s3884_s19 }
0x38aa   :  { %v2619_v34 = vpop.permute.xlu0 %2618 }
0x38ab   :  { %v2621_v35 = vmul.f32 %v3719_v26, %v2619_v34  ;;  %v2953_v34 = vld [vmem:[%s4511_s10 + $0x10] sm:$0xff] }
0x38ad   :  { %v2623_v36 = vrot.slane %v2621_v35, 4  ;;  %v2946_v37 = vsel %vm1062_vm6, %v2945_v16, %v2621_v35  ;;  %v2952_v35 = vld [vmem:[%s4511_s10 + $0x8] sm:$0xff] }
0x38af   :  { %2624 = vrot.lane.b32.xlu1 %v2623_v36, %s3885_s3  ;;  %v2951_v36 = vld [vmem:[%s4511_s10] sm:$0xff] }
0x3921   :  { %v2625_v38 = vpop.permute.xlu1 %2624 }
0x3922   :  { %3507 = vmatmul.mubr.msk.f32.vlgmr.msra.gmra.mxu0 %vm209_vm2, %v2625_v38 }
0x3923   :  { %3521 = vmatpush3.msra.mxu0 %v4319_v42  ;;  %3528 = vmatprep.mubr.msk.f32.mxu0 %vm3883_vm0, %v3882_v0 }
0x3924   :  { %3522 = vmatprep.subr.mxu0 %v3882_v0 }
0x3925   :  { %3523 = vmatpush3.msra.mxu0 %v4322_v44 }
0x3926   :  { %3524 = vmatprep.subr.mxu0 %v3882_v0 }
0x3927   :  { %3525 = vmatpush3.msra.mxu0 %v4326_v46 }
0x3928   :  { %3526 = vmatprep.subr.mxu0 %v3882_v0 }
0x3929   :  { %3527 = vmatpush3.msra.mxu0 %v4331_v48  ;;  %v2710_v48 = vrot.slane %v2615_v32, 7 }
0x39e2   :  { %v2694_v39 = vpop.f32.mrf.mxu0 }
0x39e3   :  { %v2699_v40 = vrot.slane %v2694_v39, 3 }
0x39e4   :  { %v3508_v41 = vpop.f32.mrf.mxu0 }
0x39e5   :  { %v2701_v42 = vadd.f32 %v2699_v40, %v4368_v56 }
0x39e7   :  { %3722 = vtanh.f32 %v2701_v42  ;;  %v3093_v43 = vmul.f32 -1.442695, %v2701_v42 }
0x39e9   :  { %3724 = vpow2.f32 %v3093_v43 }
0x39f4   :  { %v3723_v7 = vpop.eup %3722 }
0x39f5   :  { %2714 = vrot.lane.b32.xlu0 %v3723_v7, %s3884_s19  ;;  %v3098_v7 = vld [vmem:[%s4512_s11] ss:$0 sm:$0xff] }
0x39f6   :  { %v3725_v44 = vpop.eup %3724 }
0x39f7   :  { %v2705_v45 = vadd.f32 1.0, %v3725_v44 }
0x39f9   :  { %3726 = vrcp.f32 %v2705_v45 }
0x3a06   :  { %v3727_v47 = vpop.eup %3726 }
0x3a07   :  { %v2712_v49 = vmul.f32 %v3727_v47, %v2710_v48 }
0x3a67   :  { %v2715_v46 = vpop.permute.xlu0 %2714 }
0x3a68   :  { %v2717_v50 = vmul.f32 %v3727_v47, %v2715_v46 }
0x3a6a   :  { %2719 = vrot.lane.b32.xlu1 %v2717_v50, %s3884_s19 }
0x3adc   :  { %v2720_v10 = vpop.permute.xlu1 %2719 }
0x3add   :  { %v2722_v52 = vadd.f32 %v2720_v10, %v2712_v49 }
0x3adf   :  { %3728 = vtanh.f32 %v2722_v52  ;;  %v2817_v8 = vrot.slane %v2722_v52, 7 }
0x3aec   :  { %v3729_v51 = vpop.eup %3728 }
0x3aed   :  { %2725 = vrot.lane.b32.xlu0 %v3729_v51, %s3884_s19 }
0x3b5f   :  { %v2726_v53 = vpop.permute.xlu0 %2725 }
0x3b60   :  { %v2728_v54 = vmul.f32 %v3727_v47, %v2726_v53 }
0x3b62   :  { %v2730_v55 = vrot.slane %v2728_v54, 5  ;;  %v2947_v2 = vsel %vm1064_vm7, %v2946_v37, %v2728_v54 }
0x3b64   :  { %2731 = vrot.lane.b32.xlu1 %v2730_v55, %s3885_s3 }
0x3bd6   :  { %v2732_v57 = vpop.permute.xlu1 %2731 }
0x3bd7   :  { %3518 = vmatmul.mubr.msk.f32.vlgmr.msra.gmra.mxu1 %vm209_vm2, %v2732_v57 }
0x3bd8   :  { %3539 = vmatprep.mubr.msk.f32.mxu1 %vm3883_vm0, %v3882_v0 }
0x3c97   :  { %v2801_v58 = vpop.f32.mrf.mxu1 }
0x3c98   :  { %v2806_v4 = vrot.slane %v2801_v58, 2 }
0x3c99   :  { %v3519_v59 = vpop.f32.mrf.mxu1 }
0x3c9a   :  { %v2808_v60 = vadd.f32 %v2806_v4, %v4368_v56 }
0x3c9c   :  { %3730 = vtanh.f32 %v2808_v60  ;;  %v3095_v61 = vmul.f32 -1.442695, %v2808_v60 }
0x3c9e   :  { %3732 = vpow2.f32 %v3095_v61 }
0x3ca9   :  { %v3731_v6 = vpop.eup %3730 }
0x3caa   :  { %2821 = vrot.lane.b32.xlu0 %v3731_v6, %s3884_s19 }
0x3cab   :  { %v3733_v62 = vpop.eup %3732 }
0x3cac   :  { %v2812_v63 = vadd.f32 1.0, %v3733_v62 }
0x3cae   :  { %3734 = vrcp.f32 %v2812_v63 }
0x3cbb   :  { %v3735_v1 = vpop.eup %3734 }
0x3cbc   :  { %v2819_v9 = vmul.f32 %v3735_v1, %v2817_v8 }
0x3d1c   :  { %v2822_v3 = vpop.permute.xlu0 %2821 }
0x3d1d   :  { %v2824_v5 = vmul.f32 %v3735_v1, %v2822_v3 }
0x3d1f   :  { %2826 = vrot.lane.b32.xlu1 %v2824_v5, %s3884_s19 }
0x3d91   :  { %v2827_v11 = vpop.permute.xlu1 %2826 }
0x3d92   :  { %v2829_v12 = vadd.f32 %v2827_v11, %v2819_v9 }
0x3d94   :  { %3736 = vtanh.f32 %v2829_v12  ;;  %v2924_v30 = vrot.slane %v2829_v12, 7 }
0x3da1   :  { %v3737_v13 = vpop.eup %3736 }
0x3da2   :  { %2832 = vrot.lane.b32.xlu0 %v3737_v13, %s3884_s19 }
0x3e14   :  { %v2833_v14 = vpop.permute.xlu0 %2832 }
0x3e15   :  { %v2835_v15 = vmul.f32 %v3735_v1, %v2833_v14 }
0x3e17   :  { %v2837_v16 = vrot.slane %v2835_v15, 6  ;;  %v2948_v17 = vsel %vm1066_vm8, %v2947_v2, %v2835_v15 }
0x3e19   :  { %2838 = vrot.lane.b32.xlu1 %v2837_v16, %s3885_s3 }
0x3e8b   :  { %v2839_v18 = vpop.permute.xlu1 %2838 }
0x3e8c   :  { %3529 = vmatmul.mubr.msk.f32.vlgmr.msra.gmra.mxu0 %vm209_vm2, %v2839_v18 }
0x3f4c   :  { %v2908_v19 = vpop.f32.mrf.mxu0 }
0x3f4d   :  { %v2913_v20 = vrot.slane %v2908_v19, 1 }
0x3f4e   :  { %v3530_v21 = vpop.f32.mrf.mxu0 }
0x3f4f   :  { %v2915_v22 = vadd.f32 %v2913_v20, %v4368_v56  ;;  %v2954_v56 = vld [vmem:[%s4511_s10 + $0x18] sm:$0xff] }
0x3f50   :  { %3532 = vmatpush3.msra.mxu1 %v2954_v56 }
0x3f51   :  { %3738 = vtanh.f32 %v2915_v22  ;;  %v3097_v24 = vmul.f32 -1.442695, %v2915_v22  ;;  %3533 = vmatprep.subr.mxu1 %v3882_v0 }
0x3f52   :  { %3534 = vmatpush3.msra.mxu1 %v2953_v34 }
0x3f53   :  { %3740 = vpow2.f32 %v3097_v24  ;;  %3535 = vmatprep.subr.mxu1 %v3882_v0 }
0x3f54   :  { %3536 = vmatpush3.msra.mxu1 %v2952_v35 }
0x3f55   :  { %3537 = vmatprep.subr.mxu1 %v3882_v0 }
0x3f56   :  { %3538 = vmatpush3.msra.mxu1 %v2951_v36 }
0x3f5e   :  { %v3739_v23 = vpop.eup %3738 }
0x3f5f   :  { %2928 = vrot.lane.b32.xlu0 %v3739_v23, %s3884_s19 }
0x3f60   :  { %v3741_v25 = vpop.eup %3740 }
0x3f61   :  { %v2919_v26 = vadd.f32 1.0, %v3741_v25 }
0x3f63   :  { %3742 = vrcp.f32 %v2919_v26 }
0x3f70   :  { %v3743_v27 = vpop.eup %3742 }
0x3f71   :  { %v2926_v31 = vmul.f32 %v3743_v27, %v2924_v30 }
0x3fd1   :  { %v2929_v28 = vpop.permute.xlu0 %2928 }
0x3fd2   :  { %v2931_v29 = vmul.f32 %v3743_v27, %v2929_v28 }
0x3fd4   :  { %2933 = vrot.lane.b32.xlu1 %v2931_v29, %s3884_s19 }
0x4046   :  { %v2934_v32 = vpop.permute.xlu1 %2933 }
0x4047   :  { %v2936_v33 = vadd.f32 %v2934_v32, %v2926_v31 }
0x4049   :  { %3744 = vtanh.f32 %v2936_v33 }
0x4056   :  { %v3745_v37 = vpop.eup %3744 }
0x4057   :  { %2939 = vrot.lane.b32.xlu0 %v3745_v37, %s3884_s19 }
0x40c9   :  { %v2940_v38 = vpop.permute.xlu0 %2939 }
0x40ca   :  { %v2942_v39 = vmul.f32 %v3743_v27, %v2940_v38 }
0x40cc   :  { %v2949_v40 = vsel %vm1068_vm9, %v2948_v17, %v2942_v39 }
0x40cd   :  { %v2950_v41 = vmax.f32 %v2949_v40, 0.0 }
0x40cf   :  { %2963 = vrot.lane.b32.xlu1 %v2950_v41, %s3885_s3 }
0x4141   :  { %v2964_v42 = vpop.permute.xlu1 %2963 }
0x4142   :  { %3540 = vmatmul.mubr.msk.f32.vlgmr.msra.gmra.mxu1 %vm209_vm2, %v2964_v42 }
0x4202   :  { %v3033_v43 = vpop.f32.mrf.mxu1 }
0x4203   :  { %v3034_v0 = vadd.f32 %v3098_v7, %v3033_v43 }
0x4204   :  { %v3541_v44 = vpop.f32.mrf.mxu1 }
0x4205   :  { %3038 = vst.msk [vmem:[%s4513_s12] sm:$0xff] %vm3037_vm10, %v3034_v0 }
0x4206   :  { %3043 = vsyncpa [#allocation3], 1 }
0x4207   :  { %3044 = vsyncpa [#allocation5], 1 }
0x4208   :  { %3045 = vsyncpa [#allocation8], 1 }
0x4209   :  { %3046 = vsyncpa [#allocation11], 1 }

</bundles_post_ra>
